<compile_context>
chip_gen: v7x
topology: tpu7x:2x2x1
jax: 0.10.0
libtpu: 0.0.40
codegen_flags: <defaults>
</compile_context>

<pallas_src>
import functools
import math

import jax
import jax.numpy as jnp
from jax.experimental import pallas as pl
from jax.experimental.pallas import tpu as pltpu


def _round_up(x: int, m: int) -> int:
    return ((x + m - 1) // m) * m


def _largest_divisor_leq(n: int, target: int) -> int:
    t = max(1, min(n, target))
    for d in range(t, 0, -1):
        if n % d == 0:
            return d
    return n


def _halo_block(tm: int, need: int) -> int:
    """Largest-to-smallest power-of-two fraction of tm that is a multiple of 8
    and still >= need (so it divides tm and covers the conv halo)."""
    hb = tm
    cand = tm
    while cand % 2 == 0 and (cand // 2) >= need and (cand // 2) % 8 == 0:
        cand //= 2
        hb = cand
    return hb


# --------------------------------------------------------------------------
# Pallas kernel 1: fused 3x3 conv (stride 1, pad 1) + bias + ReLU
#   Flat-spatial formulation: output position p = h * Wp + q, tap (dy, dx)
#   reads flat input row p + dy*Wp + dx.  Columns q >= W are garbage and are
#   sliced off in the wrapper.
# --------------------------------------------------------------------------
def _conv3x3_kernel(xa_ref, xb_ref, w_ref, b_ref, o_ref, acc_ref, *, wp, tm):
    acc_ref[...] = jnp.zeros_like(acc_ref)
    # contiguous flat rows [m*TM, m*TM + TM + HB)
    xcat = jnp.concatenate([xa_ref[...], xb_ref[...]], axis=0)
    span = tm + 2 * wp
    for dx in range(3):
        xs = xcat[dx:dx + span, :]                  # one sublane shift per dx
        for dy in range(3):
            lhs = xs[dy * wp: dy * wp + tm, :]      # aligned (wp % 8 == 0)
            acc_ref[...] += jnp.dot(lhs, w_ref[dy * 3 + dx],
                                    preferred_element_type=jnp.float32)
    y = jnp.maximum(acc_ref[...] + b_ref[...], 0.0)
    o_ref[...] = y.astype(o_ref.dtype)


def conv3x3_relu(x, w, b, *, tm_target: int = 1024, tcout_target: int = 256):
    """x: (N,H,W,Cin), w: (3,3,Cin,Cout) [HWIO], b: (Cout,) -> (N,H,W,Cout) bf16."""
    N, H, W, Cin = x.shape
    Cout = w.shape[-1]
    x = x.astype(jnp.bfloat16)

    Wp = _round_up(W + 2, 8)          # padded width (multiple of 8)
    Mo = H * Wp                       # flat output rows (incl. garbage columns)
    halo = 2 * Wp + 2                 # max tap offset (dy=2, dx=2)

    TM = max(_round_up(min(Mo, tm_target), 8), _round_up(halo, 8))
    n_m = -(-Mo // TM)
    Mo_pad = n_m * TM
    HB = _halo_block(TM, halo)        # halo block: divides TM, multiple of 8
    S_in = Mo_pad + TM                # padded flat input length

    TCout = Cout if Cout <= tcout_target else tcout_target
    if Cout % TCout != 0:
        TCout = Cout
    n_j = Cout // TCout

    xpad = jnp.pad(x, ((0, 0), (1, 1), (1, Wp - W - 1), (0, 0)))
    xflat = xpad.reshape(N, (H + 2) * Wp, Cin)
    xflat = jnp.pad(xflat, ((0, 0), (0, S_in - (H + 2) * Wp), (0, 0)))

    wr = w.reshape(9, Cin, Cout).astype(jnp.bfloat16)
    br = b.reshape(1, Cout).astype(jnp.float32)

    ratio = TM // HB

    out_flat = pl.pallas_call(
        functools.partial(_conv3x3_kernel, wp=Wp, tm=TM),
        out_shape=jax.ShapeDtypeStruct((N, Mo_pad, Cout), jnp.bfloat16),
        grid_spec=pltpu.PrefetchScalarGridSpec(
            num_scalar_prefetch=0,
            grid=(N, n_j, n_m),
            in_specs=[
                # main tile of flat rows
                pl.BlockSpec((None, TM, Cin), lambda n, j, m: (n, m, 0)),
                # halo: first HB rows of the *next* tile (same array, 2nd view)
                pl.BlockSpec((None, HB, Cin),
                             lambda n, j, m: (n, (m + 1) * ratio, 0)),
                # weights: (9, Cin, TCout), constant over the m axis
                pl.BlockSpec((9, Cin, TCout), lambda n, j, m: (0, 0, j)),
                pl.BlockSpec((1, TCout), lambda n, j, m: (0, j)),
            ],
            out_specs=pl.BlockSpec((None, TM, TCout), lambda n, j, m: (n, m, j)),
            scratch_shapes=[pltpu.VMEM((TM, TCout), jnp.float32)],
        ),
        compiler_params=pltpu.CompilerParams(
            dimension_semantics=("parallel", "parallel", "parallel"),
            # blocks are <10 MiB worst-case -> safe even for v7x's 64 MiB VMEM
            vmem_limit_bytes=48 * 1024 * 1024,
        ),
    )(xflat, xflat, wr, br)

    out = out_flat[:, :Mo, :].reshape(N, H, Wp, Cout)[:, :, :W, :]
    return out


# --------------------------------------------------------------------------
# Pallas kernel 2: 2x2 / stride-2 max-pool, tiled over (batch, row blocks)
# --------------------------------------------------------------------------
def _maxpool_kernel(x_ref, o_ref, *, c):
    x = x_ref[...]                                 # (2*TR, W2, 2C)
    xc = jnp.maximum(x[:, :, :c], x[:, :, c:])     # column-pair max -> (2*TR, W2, C)
    tr = o_ref.shape[0]
    xr = xc.reshape(tr, 2, xc.shape[1], c)         # split outer dim (layout-free)
    o_ref[...] = jnp.max(xr, axis=1)               # row-pair max


def maxpool2x2(x, *, block_bytes: int = 2 * 1024 * 1024):
    """x: (N, H, W, C) -> (N, H//2, W//2, C) (floors odd sizes like MaxPool2d)."""
    N, H, W, C = x.shape
    H2, W2 = H // 2, W // 2
    x = x[:, :2 * H2, :2 * W2, :]
    xv = x.reshape(N, 2 * H2, W2, 2 * C)           # free, layout-preserving
    bytes_per_out_row = 2 * W2 * 2 * C * x.dtype.itemsize
    tr = _largest_divisor_leq(H2, max(1, block_bytes // max(1, bytes_per_out_row)))
    return pl.pallas_call(
        functools.partial(_maxpool_kernel, c=C),
        out_shape=jax.ShapeDtypeStruct((N, H2, W2, C), x.dtype),
        grid_spec=pltpu.PrefetchScalarGridSpec(
            num_scalar_prefetch=0,
            grid=(N, H2 // tr),
            in_specs=[pl.BlockSpec((None, 2 * tr, W2, 2 * C),
                                   lambda n, m: (n, m, 0, 0))],
            out_specs=pl.BlockSpec((None, tr, W2, C),
                                   lambda n, m: (n, m, 0, 0)),
        ),
        compiler_params=pltpu.CompilerParams(
            dimension_semantics=("parallel", "parallel"),
            vmem_limit_bytes=48 * 1024 * 1024,
        ),
    )(xv)


# --------------------------------------------------------------------------
# Pallas kernel 3: bilinear resize (align_corners=False), lane-dense (C last)
# --------------------------------------------------------------------------
def _interp_coeffs(in_size: int, out_size: int):
    o = jnp.arange(out_size, dtype=jnp.float32)
    src = jnp.clip((o + 0.5) * (in_size / out_size) - 0.5, 0.0, float(in_size - 1))
    i0 = jnp.floor(src).astype(jnp.int32)
    i1 = jnp.minimum(i0 + 1, in_size - 1)
    lam = src - i0.astype(jnp.float32)
    return i0, i1, lam


def _resize_kernel(h0_ref, h1_ref, x0_ref, x1_ref, rw0_ref, rw1_ref, o_ref):
    r0 = x0_ref[...].astype(jnp.float32)           # (W, C) source row h0
    r1 = x1_ref[...].astype(jnp.float32)           # (W, C) source row h1
    o = (jnp.dot(rw0_ref[...], r0, preferred_element_type=jnp.float32)
         + jnp.dot(rw1_ref[...], r1, preferred_element_type=jnp.float32))
    o_ref[...] = o.astype(o_ref.dtype)


def bilinear_resize(x, scale: float):
    """x: (N, H, W, C) -> (N, floor(H*scale), floor(W*scale), C) f32."""
    N, H, W, C = x.shape
    Hout = int(math.floor(H * scale))
    Wout = int(math.floor(W * scale))
    h0, h1, lh = _interp_coeffs(H, Hout)
    w0, w1, lw = _interp_coeffs(W, Wout)
    Rw = (jax.nn.one_hot(w0, W, dtype=jnp.float32) * (1.0 - lw)[:, None]
          + jax.nn.one_hot(w1, W, dtype=jnp.float32) * lw[:, None])   # (Wout, W)
    Rw0 = Rw[None] * (1.0 - lh)[:, None, None]                         # (Hout, Wout, W)
    Rw1 = Rw[None] * lh[:, None, None]

    return pl.pallas_call(
        _resize_kernel,
        out_shape=jax.ShapeDtypeStruct((N, Hout, Wout, C), jnp.float32),
        grid_spec=pltpu.PrefetchScalarGridSpec(
            num_scalar_prefetch=2,                  # h0, h1 row-index tables
            grid=(N, Hout),
            in_specs=[
                pl.BlockSpec((None, None, W, C),
                             lambda n, ho, h0r, h1r: (n, h0r[ho], 0, 0)),
                pl.BlockSpec((None, None, W, C),
                             lambda n, ho, h0r, h1r: (n, h1r[ho], 0, 0)),
                pl.BlockSpec((None, Wout, W),
                             lambda n, ho, h0r, h1r: (ho, 0, 0)),
                pl.BlockSpec((None, Wout, W),
                             lambda n, ho, h0r, h1r: (ho, 0, 0)),
            ],
            out_specs=pl.BlockSpec((None, None, Wout, C),
                                   lambda n, ho, h0r, h1r: (n, ho, 0, 0)),
        ),
        compiler_params=pltpu.CompilerParams(
            dimension_semantics=("parallel", "arbitrary"),
        ),
    )(h0, h1, x, x, Rw0, Rw1)


# --------------------------------------------------------------------------
# VGG module (features = VGG-style conv/ReLU/maxpool stack, stride-16, 512 ch)
# --------------------------------------------------------------------------
def make_features(cfg, key, in_channels=3):
    layers = []
    c = in_channels
    for v in cfg:
        if v == 'M':
            layers.append(('pool',))
        else:
            key, wk = jax.random.split(key)
            w = jax.random.normal(wk, (3, 3, c, v), jnp.float32) * jnp.sqrt(2.0 / (9 * c))
            b = jnp.zeros((v,), jnp.float32)
            layers.append(('conv', w, b))
            c = v
    return layers


class VGG:
    """Mirror of the PyTorch VGG wrapper: features(x), then optional bilinear
    interpolate by encoder_reduction / reduction.  I/O in NCHW like PyTorch."""

    def __init__(self, features, reduction=None):
        self.features = features
        self.encoder_reduction = 16
        self.reduction = self.encoder_reduction if reduction is None else reduction
        self.channels = 512

    def __call__(self, x):                      # x: (N, C, H, W)
        x = jnp.transpose(x, (0, 2, 3, 1))      # -> NHWC
        for layer in self.features:
            if layer[0] == 'conv':
                _, w, b = layer
                x = conv3x3_relu(x, w, b)
            else:
                x = maxpool2x2(x)
        if self.encoder_reduction != self.reduction:
            x = bilinear_resize(x, self.encoder_reduction / self.reduction)
        return jnp.transpose(x, (0, 3, 1, 2)).astype(jnp.float32)   # -> NCHW


if __name__ == "__main__":
    key = jax.random.PRNGKey(0)
    kx, kp, k1, k2, k3 = jax.random.split(key, 5)

    # ---- light correctness checks against plain-JAX references -------------
    # conv3x3+bias+ReLU (bf16 matmul, f32 accumulate -> loose tolerance)
    xh = jax.random.normal(k1, (2, 8, 8, 16), jnp.float32)
    wh = jax.random.normal(k2, (3, 3, 16, 32), jnp.float32) * 0.1
    bh = jax.random.normal(k3, (32,), jnp.float32) * 0.1
    got_c = conv3x3_relu(xh, wh, bh).astype(jnp.float32)
    ref_c = jax.nn.relu(
        jax.lax.conv_general_dilated(
            xh.astype(jnp.bfloat16).astype(jnp.float32),
            wh.astype(jnp.bfloat16).astype(jnp.float32),
            (1, 1), "SAME", dimension_numbers=("NHWC", "HWIO", "NHWC")) + bh)
    err_c = float(jnp.max(jnp.abs(got_c - ref_c)))
    assert err_c <= 2e-2 * float(jnp.max(jnp.abs(ref_c))) + 1e-2, err_c

    # maxpool2x2 (exact)
    xp_ = jax.random.normal(k1, (2, 8, 8, 16), jnp.float32).astype(jnp.bfloat16)
    got_p = maxpool2x2(xp_).astype(jnp.float32)
    ref_p = jnp.max(xp_.astype(jnp.float32).reshape(2, 4, 2, 4, 2, 16), axis=(2, 4))
    assert float(jnp.max(jnp.abs(got_p - ref_p))) <= 1e-5

    # bilinear resize
    xr_ = jax.random.normal(k2, (2, 3, 5, 32), jnp.float32).astype(jnp.bfloat16)
    got_r = bilinear_resize(xr_, 2.0)
    h0r, h1r, lhr = _interp_coeffs(3, 6)
    w0r, w1r, lwr = _interp_coeffs(5, 10)
    xrf = xr_.astype(jnp.float32)
    rows = (xrf[:, h0r] * (1.0 - lhr)[None, :, None, None]
            + xrf[:, h1r] * lhr[None, :, None, None])
    ref_r = (rows[:, :, w0r] * (1.0 - lwr)[None, None, :, None]
             + rows[:, :, w1r] * lwr[None, None, :, None])
    assert float(jnp.max(jnp.abs(got_r - ref_r))) <= 1e-4

    # ---- full model (synthetic weights) -------------------------------------
    cfg = [64, 'M', 128, 'M', 256, 'M', 512, 'M', 512]
    feats = make_features(cfg, kp, in_channels=3)
    x = jax.random.normal(kx, (2, 3, 32, 32), jnp.float32)   # NCHW input

    model = VGG(feats)                       # reduction=None -> no resize
    y = jax.block_until_ready(model(x))
    assert y.shape == (2, 512, 2, 2), y.shape
    assert bool(jnp.isfinite(y).all())

    model8 = VGG(feats, reduction=8)         # exercises the bilinear-resize path
    y8 = jax.block_until_ready(model8(x))
    assert y8.shape == (2, 512, 4, 4), y8.shape
    assert bool(jnp.isfinite(y8).all())

    print("KERNEL_OK")
</pallas_src>

<mosaic_0001>
module attributes {stable_mosaic.version = 11 : i64} {
  func.func @_conv3x3_kernel(%arg0: i32, %arg1: i32, %arg2: i32, %arg3: memref<1x128x16xbf16, #tpu.memory_space<vmem>>, %arg4: memref<1x64x16xbf16, #tpu.memory_space<vmem>>, %arg5: memref<9x16x32xbf16, #tpu.memory_space<vmem>>, %arg6: memref<1x32xf32, #tpu.memory_space<vmem>>, %arg7: memref<1x128x32xbf16, #tpu.memory_space<vmem>>, %arg8: memref<128x32xf32, #tpu.memory_space<vmem>>) attributes {dimension_semantics = [#tpu.dimension_semantics<parallel>, #tpu.dimension_semantics<parallel>, #tpu.dimension_semantics<parallel>], iteration_bounds = array<i64: 2, 1, 1>, scalar_prefetch = 0 : i64, scratch_operands = 1 : i64, tpu.core_type = #tpu.core_type<tc>, window_params = [{transform_indices = @transform_0, window_bounds = array<i64: 1, 128, 16>}, {transform_indices = @transform_1, window_bounds = array<i64: 1, 64, 16>}, {transform_indices = @transform_2, window_bounds = array<i64: 9, 16, 32>}, {transform_indices = @transform_3, window_bounds = array<i64: 1, 32>}, {transform_indices = @transform_4, window_bounds = array<i64: 1, 128, 32>}]} {
    %cst = arith.constant 0.000000e+00 : f32
    %0 = vector.broadcast %cst : f32 to vector<128x32xf32>
    %c0 = arith.constant 0 : index
    %c0_0 = arith.constant 0 : index
    %1 = vector.load %arg8[%c0, %c0_0] : memref<128x32xf32, #tpu.memory_space<vmem>>, vector<128x32xf32>
    tpu.vector_store %arg8[%c0, %c0_0], %0 {strides = array<i32>} : memref<128x32xf32, #tpu.memory_space<vmem>>, vector<128x32xf32>,
    %c0_1 = arith.constant 0 : index
    %c0_2 = arith.constant 0 : index
    %c0_3 = arith.constant 0 : index
    %2 = vector.load %arg3[%c0_1, %c0_2, %c0_3] : memref<1x128x16xbf16, #tpu.memory_space<vmem>>, vector<1x128x16xbf16>
    %3 = vector.shape_cast %2 : vector<1x128x16xbf16> to vector<128x16xbf16>
    %c0_4 = arith.constant 0 : index
    %c0_5 = arith.constant 0 : index
    %c0_6 = arith.constant 0 : index
    %4 = vector.load %arg4[%c0_4, %c0_5, %c0_6] : memref<1x64x16xbf16, #tpu.memory_space<vmem>>, vector<1x64x16xbf16>
    %5 = vector.shape_cast %4 : vector<1x64x16xbf16> to vector<64x16xbf16>
    %6 = tpu.concatenate %3, %5 in 0 : vector<128x16xbf16>, vector<64x16xbf16> -> vector<192x16xbf16>
    %7 = vector.extract_strided_slice %6 {offsets = [0, 0], sizes = [160, 16], strides = [1, 1]} : vector<192x16xbf16> to vector<160x16xbf16>
    %8 = vector.extract_strided_slice %7 {offsets = [0, 0], sizes = [128, 16], strides = [1, 1]} : vector<160x16xbf16> to vector<128x16xbf16>
    %c0_7 = arith.constant 0 : index
    %c0_8 = arith.constant 0 : index
    %9 = vector.load %arg8[%c0_7, %c0_8] : memref<128x32xf32, #tpu.memory_space<vmem>>, vector<128x32xf32>
    %c0_9 = arith.constant 0 : index
    %c0_10 = arith.constant 0 : index
    %c0_11 = arith.constant 0 : index
    %10 = vector.load %arg5[%c0_9, %c0_10, %c0_11] : memref<9x16x32xbf16, #tpu.memory_space<vmem>>, vector<1x16x32xbf16>
    %11 = vector.shape_cast %10 : vector<1x16x32xbf16> to vector<16x32xbf16>
    %cst_12 = arith.constant dense<0.000000e+00> : vector<128x32xf32>
    %12 = tpu.matmul %8, %11, %cst_12 {dimension_numbers = #tpu.dot_dimension_numbers<[1], [0], [0], [1], [0, 0, 1, 1], [], []>} : vector<128x16xbf16>, vector<16x32xbf16>, vector<128x32xf32> -> vector<128x32xf32>
    %13 = arith.addf %9, %12 : vector<128x32xf32>
    %c0_13 = arith.constant 0 : index
    %c0_14 = arith.constant 0 : index
    %14 = vector.load %arg8[%c0_13, %c0_14] : memref<128x32xf32, #tpu.memory_space<vmem>>, vector<128x32xf32>
    tpu.vector_store %arg8[%c0_13, %c0_14], %13 {strides = array<i32>} : memref<128x32xf32, #tpu.memory_space<vmem>>, vector<128x32xf32>,
    %15 = vector.extract_strided_slice %7 {offsets = [16, 0], sizes = [128, 16], strides = [1, 1]} : vector<160x16xbf16> to vector<128x16xbf16>
    %c0_15 = arith.constant 0 : index
    %c0_16 = arith.constant 0 : index
    %16 = vector.load %arg8[%c0_15, %c0_16] : memref<128x32xf32, #tpu.memory_space<vmem>>, vector<128x32xf32>
    %c3 = arith.constant 3 : index
    %c0_17 = arith.constant 0 : index
    %c0_18 = arith.constant 0 : index
    %17 = vector.load %arg5[%c3, %c0_17, %c0_18] : memref<9x16x32xbf16, #tpu.memory_space<vmem>>, vector<1x16x32xbf16>
    %18 = vector.shape_cast %17 : vector<1x16x32xbf16> to vector<16x32xbf16>
    %cst_19 = arith.constant dense<0.000000e+00> : vector<128x32xf32>
    %19 = tpu.matmul %15, %18, %cst_19 {dimension_numbers = #tpu.dot_dimension_numbers<[1], [0], [0], [1], [0, 0, 1, 1], [], []>} : vector<128x16xbf16>, vector<16x32xbf16>, vector<128x32xf32> -> vector<128x32xf32>
    %20 = arith.addf %16, %19 : vector<128x32xf32>
    %c0_20 = arith.constant 0 : index
    %c0_21 = arith.constant 0 : index
    %21 = vector.load %arg8[%c0_20, %c0_21] : memref<128x32xf32, #tpu.memory_space<vmem>>, vector<128x32xf32>
    tpu.vector_store %arg8[%c0_20, %c0_21], %20 {strides = array<i32>} : memref<128x32xf32, #tpu.memory_space<vmem>>, vector<128x32xf32>,
    %22 = vector.extract_strided_slice %7 {offsets = [32, 0], sizes = [128, 16], strides = [1, 1]} : vector<160x16xbf16> to vector<128x16xbf16>
    %c0_22 = arith.constant 0 : index
    %c0_23 = arith.constant 0 : index
    %23 = vector.load %arg8[%c0_22, %c0_23] : memref<128x32xf32, #tpu.memory_space<vmem>>, vector<128x32xf32>
    %c6 = arith.constant 6 : index
    %c0_24 = arith.constant 0 : index
    %c0_25 = arith.constant 0 : index
    %24 = vector.load %arg5[%c6, %c0_24, %c0_25] : memref<9x16x32xbf16, #tpu.memory_space<vmem>>, vector<1x16x32xbf16>
    %25 = vector.shape_cast %24 : vector<1x16x32xbf16> to vector<16x32xbf16>
    %cst_26 = arith.constant dense<0.000000e+00> : vector<128x32xf32>
    %26 = tpu.matmul %22, %25, %cst_26 {dimension_numbers = #tpu.dot_dimension_numbers<[1], [0], [0], [1], [0, 0, 1, 1], [], []>} : vector<128x16xbf16>, vector<16x32xbf16>, vector<128x32xf32> -> vector<128x32xf32>
    %27 = arith.addf %23, %26 : vector<128x32xf32>
    %c0_27 = arith.constant 0 : index
    %c0_28 = arith.constant 0 : index
    %28 = vector.load %arg8[%c0_27, %c0_28] : memref<128x32xf32, #tpu.memory_space<vmem>>, vector<128x32xf32>
    tpu.vector_store %arg8[%c0_27, %c0_28], %27 {strides = array<i32>} : memref<128x32xf32, #tpu.memory_space<vmem>>, vector<128x32xf32>,
    %29 = vector.extract_strided_slice %6 {offsets = [1, 0], sizes = [160, 16], strides = [1, 1]} : vector<192x16xbf16> to vector<160x16xbf16>
    %30 = vector.extract_strided_slice %29 {offsets = [0, 0], sizes = [128, 16], strides = [1, 1]} : vector<160x16xbf16> to vector<128x16xbf16>
    %c0_29 = arith.constant 0 : index
    %c0_30 = arith.constant 0 : index
    %31 = vector.load %arg8[%c0_29, %c0_30] : memref<128x32xf32, #tpu.memory_space<vmem>>, vector<128x32xf32>
    %c1 = arith.constant 1 : index
    %c0_31 = arith.constant 0 : index
    %c0_32 = arith.constant 0 : index
    %32 = vector.load %arg5[%c1, %c0_31, %c0_32] : memref<9x16x32xbf16, #tpu.memory_space<vmem>>, vector<1x16x32xbf16>
    %33 = vector.shape_cast %32 : vector<1x16x32xbf16> to vector<16x32xbf16>
    %cst_33 = arith.constant dense<0.000000e+00> : vector<128x32xf32>
    %34 = tpu.matmul %30, %33, %cst_33 {dimension_numbers = #tpu.dot_dimension_numbers<[1], [0], [0], [1], [0, 0, 1, 1], [], []>} : vector<128x16xbf16>, vector<16x32xbf16>, vector<128x32xf32> -> vector<128x32xf32>
    %35 = arith.addf %31, %34 : vector<128x32xf32>
    %c0_34 = arith.constant 0 : index
    %c0_35 = arith.constant 0 : index
    %36 = vector.load %arg8[%c0_34, %c0_35] : memref<128x32xf32, #tpu.memory_space<vmem>>, vector<128x32xf32>
    tpu.vector_store %arg8[%c0_34, %c0_35], %35 {strides = array<i32>} : memref<128x32xf32, #tpu.memory_space<vmem>>, vector<128x32xf32>,
    %37 = vector.extract_strided_slice %29 {offsets = [16, 0], sizes = [128, 16], strides = [1, 1]} : vector<160x16xbf16> to vector<128x16xbf16>
    %c0_36 = arith.constant 0 : index
    %c0_37 = arith.constant 0 : index
    %38 = vector.load %arg8[%c0_36, %c0_37] : memref<128x32xf32, #tpu.memory_space<vmem>>, vector<128x32xf32>
    %c4 = arith.constant 4 : index
    %c0_38 = arith.constant 0 : index
    %c0_39 = arith.constant 0 : index
    %39 = vector.load %arg5[%c4, %c0_38, %c0_39] : memref<9x16x32xbf16, #tpu.memory_space<vmem>>, vector<1x16x32xbf16>
    %40 = vector.shape_cast %39 : vector<1x16x32xbf16> to vector<16x32xbf16>
    %cst_40 = arith.constant dense<0.000000e+00> : vector<128x32xf32>
    %41 = tpu.matmul %37, %40, %cst_40 {dimension_numbers = #tpu.dot_dimension_numbers<[1], [0], [0], [1], [0, 0, 1, 1], [], []>} : vector<128x16xbf16>, vector<16x32xbf16>, vector<128x32xf32> -> vector<128x32xf32>
    %42 = arith.addf %38, %41 : vector<128x32xf32>
    %c0_41 = arith.constant 0 : index
    %c0_42 = arith.constant 0 : index
    %43 = vector.load %arg8[%c0_41, %c0_42] : memref<128x32xf32, #tpu.memory_space<vmem>>, vector<128x32xf32>
    tpu.vector_store %arg8[%c0_41, %c0_42], %42 {strides = array<i32>} : memref<128x32xf32, #tpu.memory_space<vmem>>, vector<128x32xf32>,
    %44 = vector.extract_strided_slice %29 {offsets = [32, 0], sizes = [128, 16], strides = [1, 1]} : vector<160x16xbf16> to vector<128x16xbf16>
    %c0_43 = arith.constant 0 : index
    %c0_44 = arith.constant 0 : index
    %45 = vector.load %arg8[%c0_43, %c0_44] : memref<128x32xf32, #tpu.memory_space<vmem>>, vector<128x32xf32>
    %c7 = arith.constant 7 : index
    %c0_45 = arith.constant 0 : index
    %c0_46 = arith.constant 0 : index
    %46 = vector.load %arg5[%c7, %c0_45, %c0_46] : memref<9x16x32xbf16, #tpu.memory_space<vmem>>, vector<1x16x32xbf16>
    %47 = vector.shape_cast %46 : vector<1x16x32xbf16> to vector<16x32xbf16>
    %cst_47 = arith.constant dense<0.000000e+00> : vector<128x32xf32>
    %48 = tpu.matmul %44, %47, %cst_47 {dimension_numbers = #tpu.dot_dimension_numbers<[1], [0], [0], [1], [0, 0, 1, 1], [], []>} : vector<128x16xbf16>, vector<16x32xbf16>, vector<128x32xf32> -> vector<128x32xf32>
    %49 = arith.addf %45, %48 : vector<128x32xf32>
    %c0_48 = arith.constant 0 : index
    %c0_49 = arith.constant 0 : index
    %50 = vector.load %arg8[%c0_48, %c0_49] : memref<128x32xf32, #tpu.memory_space<vmem>>, vector<128x32xf32>
    tpu.vector_store %arg8[%c0_48, %c0_49], %49 {strides = array<i32>} : memref<128x32xf32, #tpu.memory_space<vmem>>, vector<128x32xf32>,
    %51 = vector.extract_strided_slice %6 {offsets = [2, 0], sizes = [160, 16], strides = [1, 1]} : vector<192x16xbf16> to vector<160x16xbf16>
    %52 = vector.extract_strided_slice %51 {offsets = [0, 0], sizes = [128, 16], strides = [1, 1]} : vector<160x16xbf16> to vector<128x16xbf16>
    %c0_50 = arith.constant 0 : index
    %c0_51 = arith.constant 0 : index
    %53 = vector.load %arg8[%c0_50, %c0_51] : memref<128x32xf32, #tpu.memory_space<vmem>>, vector<128x32xf32>
    %c2 = arith.constant 2 : index
    %c0_52 = arith.constant 0 : index
    %c0_53 = arith.constant 0 : index
    %54 = vector.load %arg5[%c2, %c0_52, %c0_53] : memref<9x16x32xbf16, #tpu.memory_space<vmem>>, vector<1x16x32xbf16>
    %55 = vector.shape_cast %54 : vector<1x16x32xbf16> to vector<16x32xbf16>
    %cst_54 = arith.constant dense<0.000000e+00> : vector<128x32xf32>
    %56 = tpu.matmul %52, %55, %cst_54 {dimension_numbers = #tpu.dot_dimension_numbers<[1], [0], [0], [1], [0, 0, 1, 1], [], []>} : vector<128x16xbf16>, vector<16x32xbf16>, vector<128x32xf32> -> vector<128x32xf32>
    %57 = arith.addf %53, %56 : vector<128x32xf32>
    %c0_55 = arith.constant 0 : index
    %c0_56 = arith.constant 0 : index
    %58 = vector.load %arg8[%c0_55, %c0_56] : memref<128x32xf32, #tpu.memory_space<vmem>>, vector<128x32xf32>
    tpu.vector_store %arg8[%c0_55, %c0_56], %57 {strides = array<i32>} : memref<128x32xf32, #tpu.memory_space<vmem>>, vector<128x32xf32>,
    %59 = vector.extract_strided_slice %51 {offsets = [16, 0], sizes = [128, 16], strides = [1, 1]} : vector<160x16xbf16> to vector<128x16xbf16>
    %c0_57 = arith.constant 0 : index
    %c0_58 = arith.constant 0 : index
    %60 = vector.load %arg8[%c0_57, %c0_58] : memref<128x32xf32, #tpu.memory_space<vmem>>, vector<128x32xf32>
    %c5 = arith.constant 5 : index
    %c0_59 = arith.constant 0 : index
    %c0_60 = arith.constant 0 : index
    %61 = vector.load %arg5[%c5, %c0_59, %c0_60] : memref<9x16x32xbf16, #tpu.memory_space<vmem>>, vector<1x16x32xbf16>
    %62 = vector.shape_cast %61 : vector<1x16x32xbf16> to vector<16x32xbf16>
    %cst_61 = arith.constant dense<0.000000e+00> : vector<128x32xf32>
    %63 = tpu.matmul %59, %62, %cst_61 {dimension_numbers = #tpu.dot_dimension_numbers<[1], [0], [0], [1], [0, 0, 1, 1], [], []>} : vector<128x16xbf16>, vector<16x32xbf16>, vector<128x32xf32> -> vector<128x32xf32>
    %64 = arith.addf %60, %63 : vector<128x32xf32>
    %c0_62 = arith.constant 0 : index
    %c0_63 = arith.constant 0 : index
    %65 = vector.load %arg8[%c0_62, %c0_63] : memref<128x32xf32, #tpu.memory_space<vmem>>, vector<128x32xf32>
    tpu.vector_store %arg8[%c0_62, %c0_63], %64 {strides = array<i32>} : memref<128x32xf32, #tpu.memory_space<vmem>>, vector<128x32xf32>,
    %66 = vector.extract_strided_slice %51 {offsets = [32, 0], sizes = [128, 16], strides = [1, 1]} : vector<160x16xbf16> to vector<128x16xbf16>
    %c0_64 = arith.constant 0 : index
    %c0_65 = arith.constant 0 : index
    %67 = vector.load %arg8[%c0_64, %c0_65] : memref<128x32xf32, #tpu.memory_space<vmem>>, vector<128x32xf32>
    %c8 = arith.constant 8 : index
    %c0_66 = arith.constant 0 : index
    %c0_67 = arith.constant 0 : index
    %68 = vector.load %arg5[%c8, %c0_66, %c0_67] : memref<9x16x32xbf16, #tpu.memory_space<vmem>>, vector<1x16x32xbf16>
    %69 = vector.shape_cast %68 : vector<1x16x32xbf16> to vector<16x32xbf16>
    %cst_68 = arith.constant dense<0.000000e+00> : vector<128x32xf32>
    %70 = tpu.matmul %66, %69, %cst_68 {dimension_numbers = #tpu.dot_dimension_numbers<[1], [0], [0], [1], [0, 0, 1, 1], [], []>} : vector<128x16xbf16>, vector<16x32xbf16>, vector<128x32xf32> -> vector<128x32xf32>
    %71 = arith.addf %67, %70 : vector<128x32xf32>
    %c0_69 = arith.constant 0 : index
    %c0_70 = arith.constant 0 : index
    %72 = vector.load %arg8[%c0_69, %c0_70] : memref<128x32xf32, #tpu.memory_space<vmem>>, vector<128x32xf32>
    tpu.vector_store %arg8[%c0_69, %c0_70], %71 {strides = array<i32>} : memref<128x32xf32, #tpu.memory_space<vmem>>, vector<128x32xf32>,
    %c0_71 = arith.constant 0 : index
    %c0_72 = arith.constant 0 : index
    %73 = vector.load %arg8[%c0_71, %c0_72] : memref<128x32xf32, #tpu.memory_space<vmem>>, vector<128x32xf32>
    %c0_73 = arith.constant 0 : index
    %c0_74 = arith.constant 0 : index
    %74 = vector.load %arg6[%c0_73, %c0_74] : memref<1x32xf32, #tpu.memory_space<vmem>>, vector<1x32xf32>
    %75 = vector.broadcast %74 : vector<1x32xf32> to vector<128x32xf32>
    %76 = arith.addf %73, %75 : vector<128x32xf32>
    %cst_75 = arith.constant 0.000000e+00 : f32
    %77 = vector.broadcast %cst_75 : f32 to vector<128x32xf32>
    %78 = arith.maximumf %76, %77 : vector<128x32xf32>
    %79 = arith.truncf %78 : vector<128x32xf32> to vector<128x32xbf16>
    %c0_76 = arith.constant 0 : index
    %c0_77 = arith.constant 0 : index
    %c0_78 = arith.constant 0 : index
    %80 = vector.load %arg7[%c0_76, %c0_77, %c0_78] : memref<1x128x32xbf16, #tpu.memory_space<vmem>>, vector<1x128x32xbf16>
    %81 = vector.shape_cast %80 : vector<1x128x32xbf16> to vector<128x32xbf16>
    %82 = vector.shape_cast %79 : vector<128x32xbf16> to vector<1x128x32xbf16>
    tpu.vector_store %arg7[%c0_76, %c0_77, %c0_78], %82 {strides = array<i32>} : memref<1x128x32xbf16, #tpu.memory_space<vmem>>, vector<1x128x32xbf16>,
    return
  }
  func.func @transform_0(%arg0: i32, %arg1: i32, %arg2: i32) -> (i32, i32, i32) {
    %c0_i32 = arith.constant 0 : i32
    %c0_i32_0 = arith.constant 0 : i32
    return %arg0, %arg2, %c0_i32 : i32, i32, i32
  }
  func.func @transform_1(%arg0: i32, %arg1: i32, %arg2: i32) -> (i32, i32, i32) {
    %c1_i32 = arith.constant 1 : i32
    %0 = arith.addi %arg2, %c1_i32 : i32
    %c2_i32 = arith.constant 2 : i32
    %1 = arith.muli %0, %c2_i32 : i32
    %c0_i32 = arith.constant 0 : i32
    %c0_i32_0 = arith.constant 0 : i32
    return %arg0, %1, %c0_i32 : i32, i32, i32
  }
  func.func @transform_2(%arg0: i32, %arg1: i32, %arg2: i32) -> (i32, i32, i32) {
    %c0_i32 = arith.constant 0 : i32
    %c0_i32_0 = arith.constant 0 : i32
    %c0_i32_1 = arith.constant 0 : i32
    return %c0_i32, %c0_i32_0, %arg1 : i32, i32, i32
  }
  func.func @transform_3(%arg0: i32, %arg1: i32, %arg2: i32) -> (i32, i32) {
    %c0_i32 = arith.constant 0 : i32
    %c0_i32_0 = arith.constant 0 : i32
    return %c0_i32, %arg1 : i32, i32
  }
  func.func @transform_4(%arg0: i32, %arg1: i32, %arg2: i32) -> (i32, i32, i32) {
    %c0_i32 = arith.constant 0 : i32
    return %arg0, %arg2, %arg1 : i32, i32, i32
  }
}

</mosaic_0001>

<bundles_post_ra>
// kernel: tpu_custom_call.1
= control target key start
LH: loop header
LB: loop body
LE: loop exit
PB: predicated region body
PF: predicated region fallthrough
CT: control target
= control target key end

     0   :  { %s2783_s15 = smov 0   ;;  %s2785_s16 = smov 0   ;;  %s3287_s0 = inlined_call_operand.vmem [shape: bf16[2,256,16], index: 0, kind: input, shape index: {}]   ;;  %s3288_s1 = inlined_call_operand.vmem [shape: bf16[2,256,16], index: 1, kind: input, shape index: {}]   ;;  %s3289_s2 = inlined_call_operand.vmem [shape: bf16[9,16,32], index: 2, kind: input, shape index: {}]   ;;  %s3290_s3 = inlined_call_operand.vmem [shape: f32[1,32], index: 3, kind: input, shape index: {}]   ;;  %s3291_s4 = inlined_call_operand.vmem [shape: bf16[2,128,32], index: 4, kind: output, shape index: {}]  }
   0x1   :  { %s2787_s17 = smov 0  }
   0x2 LB: > { %s33_s18 = sadd.s32 1, %s2751_s16  ;;  %p2288_p0 = scmp.ge.s32.totalorder %s2755_s17, 1  ;;  %s2755_s17 = sphi %s2787_s17, %s14_s17   ;;  %s2751_s16 = sphi %s2785_s16, %s3293_s16   ;;  %s2747_s15 = sphi %s2783_s15, %s3292_s15  }
   0x3   : > { %p35_p1 = scmp.ge.s32.totalorder %s33_s18, 2  ;;  %p234_p2 = scmp.lt.s32.totalorder %s2755_s17, 3 }
   0x5   : > { %s3295_s18 = smov (%p35_p1, %s33_s18), 0  ;;  %p235_p3 = pnand %p2288_p0, %p234_p2 }
   0x6   : > { %v2713_v0 = vld [vmem:[%s3289_s2] sm:$0xff] (!%p235_p3)   ;;  %p290_p4 = scmp.lt.s32.totalorder (!%p235_p3), %s2747_s15, 1  ;;  %v2715_v1 = vld [vmem:[%s3289_s2 + $0x18] sm:$0xff] (!%p235_p3)   ;;  %v2721_v2 = vld [vmem:[%s3289_s2 + $0x30] sm:$0xff] (!%p235_p3)   ;;  %vm452_vm0 = vcmask (!%p235_p3), 130048   ;;  %vm1506_vm1 = vcmask (!%p235_p3), 1046528  }
   0x7   : > { %238 = sbr.rel (%p235_p3) target bundleno = 399 (0x18f), region = 36  ;;  %2686 = vmatprep.subr.bf16.mxu1 (!%p235_p3), %v2713_v0  ;;  %2524 = vmatprep.subr.bf16.mxu0 (!%p235_p3), %v2713_v0  ;;  %v2724_v3 = vld [vmem:[%s3289_s2 + $0x8] sm:$0xff] (!%p235_p3)   ;;  %v2725_v6 = vld [vmem:[%s3289_s2 + $0x20] sm:$0xff] (!%p235_p3)   ;;  %v2864_v13 = vld [vmem:[%s3289_s2 + $0x38] sm:$0xff] (!%p235_p3)   ;;  %vm334_vm2 = vcmask (!%p235_p3), 261120   ;;  %v2757_v39 = vmov (!%p235_p3), 0.0  }
   0x8   : > { %2687 = vmatpush3.bf16.msra.mxu1 (!%p235_p3), %v2713_v0  ;;  %2525 = vmatpush3.bf16.msra.mxu0 (!%p235_p3), %v2713_v0  ;;  %v2873_v16 = vld [vmem:[%s3289_s2 + $0x10] sm:$0xff] (!%p235_p3)   ;;  %345 = vst.msk [vmem:[#allocation2 + $0x50] sm:$0xff] (!%p235_p3), %vm334_vm2, %v2757_v39  ;;  %335 = vst.msk [vmem:[#allocation2] sm:$0xff] (!%p235_p3), %vm334_vm2, %v2757_v39  ;;  %vm939_vm3 = vsmask.f32 (!%p235_p3), 7424  ;;  %v2730_v63 = vld [vmem:[%s3289_s2 + $0x28] sm:$0xff] (!%p235_p3)  }
   0x9   : > { %2542 = vmatprep.subr.bf16.mxu1 (!%p235_p3), %v2715_v1  ;;  %2560 = vmatprep.subr.bf16.mxu0 (!%p235_p3), %v2721_v2  ;;  %336 = vst.msk [vmem:[#allocation2 + $0x8] sm:$0xff] (!%p235_p3), %vm334_vm2, %v2757_v39  ;;  %337 = vst.msk [vmem:[#allocation2 + $0x10] sm:$0xff] (!%p235_p3), %vm334_vm2, %v2757_v39  ;;  %v2731_v0 = vld [vmem:[%s3289_s2 + $0x40] sm:$0xff] (!%p235_p3)   ;;  %vm2120_vm4 = vcmask (!%p235_p3), 257024  }
   0xa   : > { %338 = vst.msk [vmem:[#allocation2 + $0x18] sm:$0xff] (!%p235_p3), %vm334_vm2, %v2757_v39  ;;  %339 = vst.msk [vmem:[#allocation2 + $0x20] sm:$0xff] (!%p235_p3), %vm334_vm2, %v2757_v39 }
   0xb   : > { %340 = vst.msk [vmem:[#allocation2 + $0x28] sm:$0xff] (!%p235_p3), %vm334_vm2, %v2757_v39  ;;  %341 = vst.msk [vmem:[#allocation2 + $0x30] sm:$0xff] (!%p235_p3), %vm334_vm2, %v2757_v39 }
   0xc   : > { %342 = vst.msk [vmem:[#allocation2 + $0x38] sm:$0xff] (!%p235_p3), %vm334_vm2, %v2757_v39  ;;  %343 = vst.msk [vmem:[#allocation2 + $0x40] sm:$0xff] (!%p235_p3), %vm334_vm2, %v2757_v39 }
   0xd   : > { %344 = vst.msk [vmem:[#allocation2 + $0x48] sm:$0xff] (!%p235_p3), %vm334_vm2, %v2757_v39  ;;  %346 = vst.msk [vmem:[#allocation2 + $0x58] sm:$0xff] (!%p235_p3), %vm334_vm2, %v2757_v39 }
   0xe   : > { %s3297_s15 = smov (!%p290_p4, %s2747_s15), 1  ;;  %347 = vst.msk [vmem:[#allocation2 + $0x60] sm:$0xff] %vm334_vm2, %v2757_v39  ;;  %348 = vst.msk [vmem:[#allocation2 + $0x68] sm:$0xff] %vm334_vm2, %v2757_v39 }
   0xf   : > { %s2422_s25 = sshll.u32 %s3297_s15, 7  ;;  %349 = vst.msk [vmem:[#allocation2 + $0x70] sm:$0xff] %vm334_vm2, %v2757_v39  ;;  %350 = vst.msk [vmem:[#allocation2 + $0x78] sm:$0xff] %vm334_vm2, %v2757_v39 }
  0x10   : > { %s297_s28 = scalar_lea.vmem %s3287_s0, %s2422_s25  ;;  %s2424_s7 = sadd.s32 64, %s2422_s25 }
  0x11   : > { %v2819_v4 = vld [vmem:[%s297_s28 + $0x20] sm:$0xff]   ;;  %v2821_v5 = vld [vmem:[%s297_s28 + $0x28] sm:$0xff]   ;;  %v2836_v9 = vld [vmem:[%s297_s28 + $0x30] sm:$0xff]   ;;  %s309_s10 = scalar_lea.vmem %s3288_s1, %s2424_s7  ;;  %s2425_s25 = sshll.u32 %s3297_s15, 6 }
  0x12   : > { %2534 = vmatprep.mubr.msk.bf16.mxu1 %vm452_vm0, %v2819_v4  ;;  %v2828_v7 = vld [vmem:[%s297_s28] sm:$0xff]   ;;  %v2832_v8 = vld [vmem:[%s297_s28 + $0x8] sm:$0xff]   ;;  %v2842_v10 = vld [vmem:[%s297_s28 + $0x10] sm:$0xff]   ;;  %v1514_v20 = vrot.slane %v2819_v4, 1  ;;  %v1516_v22 = vrot.slane %v2821_v5, 1  ;;  %v1518_v23 = vrot.slane %v2836_v9, 1  ;;  %s3218_s27 = scalar_lea.vmem %s3291_s4, %s2425_s25 }
  0x13   : > { %2535 = vmatmul.mubr.msk.bf16.vlgmr.msra.gmra.mrb[0].mxu1 %vm452_vm0, %v2821_v5  ;;  %2526 = vmatprep.mubr.msk.bf16.mxu0 %vm452_vm0, %v2828_v7  ;;  %v2844_v11 = vld [vmem:[%s297_s28 + $0x38] sm:$0xff]   ;;  %v1507_v14 = vrot.slane %v2828_v7, 1  ;;  %v1508_v15 = vrot.slane %v2832_v8, 1  ;;  %v1510_v17 = vrot.slane %v2842_v10, 1  ;;  %v2893_v24 = vld [vmem:[%s309_s10] sm:$0xff]   ;;  %v2895_v25 = vld [vmem:[%s309_s10 + $0x8] sm:$0xff]  }
  0x14   : > { %2543 = vmatpush3.bf16.msra.mxu1 %v2715_v1  ;;  %2527 = vmatmul.mubr.msk.bf16.vlgmr.msra.gmra.mrb[0].mxu0 %vm452_vm0, %v2832_v8  ;;  %v2851_v12 = vld [vmem:[%s297_s28 + $0x18] sm:$0xff]   ;;  %v2903_v28 = vld [vmem:[%s309_s10 + $0x10] sm:$0xff]   ;;  %v2907_v29 = vsel %vm1506_vm1, %v1514_v20, %v1516_v22  ;;  %v2910_v30 = vsel %vm1506_vm1, %v1516_v22, %v1518_v23  ;;  %v1520_v31 = vrot.slane %v2844_v11, 1  ;;  %v1522_v32 = vrot.slane %v2893_v24, 1 }
  0x15   : > { %2578 = vmatprep.subr.bf16.mxu1 %v2724_v3  ;;  %2538 = vmatprep.mubr.msk.bf16.mxu1 %vm452_vm0, %v2836_v9  ;;  %v2879_v18 = vsel %vm1506_vm1, %v1507_v14, %v1508_v15  ;;  %v1512_v19 = vrot.slane %v2851_v12, 1  ;;  %v2887_v21 = vsel %vm1506_vm1, %v1508_v15, %v1510_v17  ;;  %v1702_v33 = vrot.slane %v2895_v25, 1 }
  0x16   : > { %2561 = vmatpush3.bf16.msra.mxu0 %v2721_v2  ;;  %2530 = vmatprep.mubr.msk.bf16.mxu0 %vm452_vm0, %v2842_v10  ;;  %v1861_v34 = vrot.slane %v2903_v28, 1  ;;  %v2917_v35 = vsel %vm1506_vm1, %v1518_v23, %v1520_v31  ;;  %v2920_v36 = vsel %vm1506_vm1, %v1520_v31, %v1522_v32  ;;  %v942_v40 = vshll.u32 %v2828_v7, 16 }
  0x17   : > { %2596 = vmatprep.subr.bf16.mxu0 %v2725_v6  ;;  %v2898_v26 = vsel %vm1506_vm1, %v1510_v17, %v1512_v19  ;;  %v2901_v27 = vsel %vm1506_vm1, %v1512_v19, %v1514_v20  ;;  %v2923_v37 = vsel %vm1506_vm1, %v1522_v32, %v1702_v33  ;;  %v940_v41 = vshrl.u32 %v2828_v7, 16 }
  0x18   : > { %v2926_v38 = vsel %vm1506_vm1, %v1702_v33, %v1861_v34  ;;  %v944_v42 = vrot.slane %v942_v40, 1  ;;  %v946_v43 = vshll.u32 %v2832_v8, 16  ;;  %v950_v46 = vshrl.u32 %v2832_v8, 16 }
  0x19   : > { %v953_v47 = vshll.u32 %v2842_v10, 16  ;;  %v957_v48 = vshrl.u32 %v2842_v10, 16  ;;  %v960_v52 = vshll.u32 %v2851_v12, 16  ;;  %v967_v53 = vshll.u32 %v2819_v4, 16 }
  0x1a   : > { %v945_v44 = vor.u32 %v944_v42, %v940_v41  ;;  %v948_v45 = vrot.slane %v946_v43, 1  ;;  %v964_v57 = vshrl.u32 %v2851_v12, 16  ;;  %v971_v58 = vshrl.u32 %v2819_v4, 16  ;;  %v428_v41 = vld [vmem:[#allocation2] sm:$0xff] }
  0x1b   : > { %2539 = vmatmul.mubr.msk.bf16.gmra.mrb[4].mxu1 %vm452_vm0, %v2844_v11  ;;  %v955_v51 = vrot.slane %v953_v47, 1  ;;  %v962_v56 = vrot.slane %v960_v52, 1  ;;  %v969_v61 = vrot.slane %v967_v53, 1  ;;  %v974_v62 = vshll.u32 %v2821_v5, 16  ;;  %v442_v53 = vld [vmem:[#allocation2 + $0x70] sm:$0xff] }
  0x1c   : > { %2544 = vmatprep.mubr.msk.bf16.mxu1 %vm452_vm0, %v2832_v8  ;;  %2531 = vmatmul.mubr.msk.bf16.gmra.mrb[4].mxu0 %vm452_vm0, %v2851_v12  ;;  %v949_v49 = vsel %vm939_vm3, %v945_v44, %v948_v45  ;;  %v952_v50 = vor.u32 %v950_v46, %v948_v45  ;;  %v978_v1 = vshrl.u32 %v2821_v5, 16  ;;  %v988_v7 = vshll.u32 %v2844_v11, 16  ;;  %v431_v44 = vld [vmem:[#allocation2 + $0x18] sm:$0xff] }
  0x1d   : > { %2562 = vmatprep.mubr.msk.bf16.mxu0 %vm452_vm0, %v2842_v10  ;;  %v959_v55 = vor.u32 %v957_v48, %v955_v51  ;;  %v966_v60 = vor.u32 %v964_v57, %v962_v56  ;;  %v995_v17 = vshll.u32 %v2893_v24, 16  ;;  %v1177_v22 = vshrl.u32 %v2893_v24, 16  ;;  %v443_v57 = vld [vmem:[#allocation2 + $0x78] sm:$0xff] }
  0x1e   : > { %v956_v54 = vsel %vm939_vm3, %v952_v50, %v955_v51  ;;  %v1180_v23 = vshll.u32 %v2895_v25, 16 }
  0x1f   : > { %v963_v59 = vsel %vm939_vm3, %v959_v55, %v962_v56  ;;  %v970_v2 = vsel %vm939_vm3, %v966_v60, %v969_v61  ;;  %v440_v55 = vld [vmem:[#allocation2 + $0x60] sm:$0xff] }
  0x20   : > { %v1182_v32 = vrot.slane %v1180_v23, 1 }
  0x23   : > { %2545 = vmatmul.mubr.msk.bf16.vlgmr.msra.gmra.mrb[8].mxu1 %vm452_vm0, %v2842_v10 }
  0x24   : > { %2579 = vmatpush3.bf16.msra.mxu1 %v2724_v3  ;;  %2548 = vmatprep.mubr.msk.bf16.mxu1 %vm452_vm0, %v2851_v12  ;;  %v973_v3 = vor.u32 %v971_v58, %v969_v61  ;;  %v434_v58 = vld [vmem:[#allocation2 + $0x30] sm:$0xff]  ;;  %v441_v61 = vld [vmem:[#allocation2 + $0x68] sm:$0xff] }
  0x25   : > { %2563 = vmatmul.mubr.msk.bf16.vlgmr.msra.gmra.mrb[8].mxu0 %vm452_vm0, %v2851_v12  ;;  %2614 = vmatprep.subr.bf16.mxu1 %v2864_v13  ;;  %v985_v12 = vshrl.u32 %v2836_v9, 16 }
  0x26   : > { %2597 = vmatpush3.bf16.msra.mxu0 %v2725_v6  ;;  %2566 = vmatprep.mubr.msk.bf16.mxu0 %vm452_vm0, %v2819_v4  ;;  %v981_v6 = vshll.u32 %v2836_v9, 16 }
  0x27   : > { %2632 = vmatprep.subr.bf16.mxu0 %v2873_v16 }
  0x2b   : > { %2549 = vmatmul.mubr.msk.bf16.gmra.mrb[12].mxu1 %vm452_vm0, %v2819_v4  ;;  %v976_v4 = vrot.slane %v974_v62, 1  ;;  %v432_v62 = vld [vmem:[#allocation2 + $0x20] sm:$0xff] }
  0x2c   : > { %2552 = vmatprep.mubr.msk.bf16.mxu1 %vm452_vm0, %v2821_v5 }
  0x2d   : > { %2567 = vmatmul.mubr.msk.bf16.gmra.mrb[12].mxu0 %vm452_vm0, %v2821_v5  ;;  %v977_v8 = vsel %vm939_vm3, %v973_v3, %v976_v4  ;;  %v980_v10 = vor.u32 %v978_v1, %v976_v4  ;;  %v983_v5 = vrot.slane %v981_v6, 1 }
  0x2e   : > { %2570 = vmatprep.mubr.msk.bf16.mxu0 %vm452_vm0, %v2836_v9 }
  0x2f   : > { %v984_v14 = vsel %vm939_vm3, %v980_v10, %v983_v5  ;;  %v987_v15 = vor.u32 %v985_v12, %v983_v5 }
  0x33   : > { %2553 = vmatmul.mubr.msk.bf16.gmra.mrb[16].mxu1 %vm452_vm0, %v2836_v9  ;;  %v997_v9 = vrot.slane %v995_v17, 1 }
  0x34   : > { %2556 = vmatprep.mubr.msk.bf16.mxu1 %vm452_vm0, %v2844_v11 }
  0x35   : > { %2571 = vmatmul.mubr.msk.bf16.gmra.mrb[16].mxu0 %vm452_vm0, %v2844_v11  ;;  %v1179_v31 = vor.u32 %v1177_v22, %v997_v9 }
  0x36   : > { %2574 = vmatprep.mubr.msk.bf16.mxu0 %vm452_vm0, %v2893_v24 }
  0x37   : > { %v1183_v33 = vsel %vm939_vm3, %v1179_v31, %v1182_v32 }
  0x3b   : > { %2557 = vmatmul.mubr.msk.bf16.gmra.mrb[20].mxu1 %vm452_vm0, %v2893_v24  ;;  %v1345_v24 = vshll.u32 %v2903_v28, 16  ;;  %v430_v28 = vld [vmem:[#allocation2 + $0x10] sm:$0xff] }
  0x3c   : > { %2580 = vmatprep.mubr.msk.bf16.mxu1 %vm452_vm0, %v949_v49 }
  0x3d   : > { %2575 = vmatmul.mubr.msk.bf16.gmra.mrb[20].mxu0 %vm452_vm0, %v2895_v25  ;;  %v1347_v39 = vrot.slane %v1345_v24, 1 }
  0x3e   : > { %2598 = vmatprep.mubr.msk.bf16.mxu0 %vm452_vm0, %v956_v54 }
  0x43   : > { %2581 = vmatmul.mubr.msk.bf16.vlgmr.msra.gmra.mrb[24].mxu1 %vm452_vm0, %v956_v54 }
  0x44   : > { %2615 = vmatpush3.bf16.msra.mxu1 %v2864_v13  ;;  %2584 = vmatprep.mubr.msk.bf16.mxu1 %vm452_vm0, %v963_v59  ;;  %v990_v13 = vrot.slane %v988_v7, 1 }
  0x45   : > { %2599 = vmatmul.mubr.msk.bf16.vlgmr.msra.gmra.mrb[24].mxu0 %vm452_vm0, %v963_v59  ;;  %2650 = vmatprep.subr.bf16.mxu1 %v2730_v63 }
  0x46   : > { %2633 = vmatpush3.bf16.msra.mxu0 %v2873_v16  ;;  %2602 = vmatprep.mubr.msk.bf16.mxu0 %vm452_vm0, %v970_v2  ;;  %v992_v16 = vshrl.u32 %v2844_v11, 16  ;;  %v991_v19 = vsel %vm939_vm3, %v987_v15, %v990_v13 }
  0x47   : > { %2668 = vmatprep.subr.bf16.mxu0 %v2731_v0 }
  0x48   : > { %v994_v20 = vor.u32 %v992_v16, %v990_v13 }
  0x4a   : > { %v998_v11 = vsel %vm939_vm3, %v994_v20, %v997_v9 }
  0x4b   : > { %2585 = vmatmul.mubr.msk.bf16.gmra.mrb[28].mxu1 %vm452_vm0, %v970_v2 }
  0x4c   : > { %2588 = vmatprep.mubr.msk.bf16.mxu1 %vm452_vm0, %v977_v8 }
  0x4d   : > { %2603 = vmatmul.mubr.msk.bf16.gmra.mrb[28].mxu0 %vm452_vm0, %v977_v8 }
  0x4e   : > { %2606 = vmatprep.mubr.msk.bf16.mxu0 %vm452_vm0, %v984_v14 }
  0x53   : > { %2589 = vmatmul.mubr.msk.bf16.gmra.mrb[32].mxu1 %vm452_vm0, %v984_v14 }
  0x54   : > { %2592 = vmatprep.mubr.msk.bf16.mxu1 %vm452_vm0, %v991_v19 }
  0x55   : > { %2607 = vmatmul.mubr.msk.bf16.gmra.mrb[32].mxu0 %vm452_vm0, %v991_v19 }
  0x56   : > { %2610 = vmatprep.mubr.msk.bf16.mxu0 %vm452_vm0, %v998_v11 }
  0x5b   : > { %2593 = vmatmul.mubr.msk.bf16.gmra.mrb[36].mxu1 %vm452_vm0, %v998_v11 }
  0x5c   : > { %2616 = vmatprep.mubr.msk.bf16.mxu1 %vm452_vm0, %v963_v59 }
  0x5d   : > { %2611 = vmatmul.mubr.msk.bf16.gmra.mrb[36].mxu0 %vm452_vm0, %v1183_v33 }
  0x5e   : > { %2634 = vmatprep.mubr.msk.bf16.mxu0 %vm452_vm0, %v2879_v18  ;;  %v1341_v18 = vshrl.u32 %v2895_v25, 16  ;;  %v436_v25 = vld [vmem:[#allocation2 + $0x40] sm:$0xff] }
  0x60   : > { %v1343_v34 = vor.u32 %v1341_v18, %v1182_v32 }
  0x62   : > { %v1348_v40 = vsel %vm939_vm3, %v1343_v34, %v1347_v39 }
  0x63   : > { %2617 = vmatmul.mubr.msk.bf16.vlgmr.msra.gmra.mrb[40].mxu1 %vm452_vm0, %v970_v2  ;;  %v435_v2 = vld [vmem:[#allocation2 + $0x38] sm:$0xff] }
  0x64   : > { %2651 = vmatpush3.bf16.msra.mxu1 %v2730_v63  ;;  %2620 = vmatprep.mubr.msk.bf16.mxu1 %vm452_vm0, %v977_v8  ;;  %v433_v8 = vld [vmem:[#allocation2 + $0x28] sm:$0xff] }
  0x65   : > { %2635 = vmatmul.mubr.msk.bf16.vlgmr.msra.gmra.mrb[40].mxu0 %vm452_vm0, %v2887_v21 }
  0x66   : > { %2669 = vmatpush3.bf16.msra.mxu0 %v2731_v0  ;;  %2638 = vmatprep.mubr.msk.bf16.mxu0 %vm452_vm0, %v2898_v26 }
  0x6b   : > { %2621 = vmatmul.mubr.msk.bf16.gmra.mrb[44].mxu1 %vm452_vm0, %v984_v14 }
  0x6c   : > { %2624 = vmatprep.mubr.msk.bf16.mxu1 %vm452_vm0, %v991_v19 }
  0x6d   : > { %2639 = vmatmul.mubr.msk.bf16.gmra.mrb[44].mxu0 %vm452_vm0, %v2901_v27 }
  0x6e   : > { %2642 = vmatprep.mubr.msk.bf16.mxu0 %vm452_vm0, %v2907_v29 }
  0x73   : > { %2625 = vmatmul.mubr.msk.bf16.gmra.mrb[48].mxu1 %vm452_vm0, %v998_v11 }
  0x74   : > { %2628 = vmatprep.mubr.msk.bf16.mxu1 %vm452_vm0, %v1183_v33 }
  0x75   : > { %2643 = vmatmul.mubr.msk.bf16.gmra.mrb[48].mxu0 %vm452_vm0, %v2910_v30 }
  0x76   : > { %2646 = vmatprep.mubr.msk.bf16.mxu0 %vm452_vm0, %v2917_v35 }
  0x7b   : > { %2629 = vmatmul.mubr.msk.bf16.gmra.mrb[52].mxu1 %vm452_vm0, %v1348_v40 }
  0x7c   : > { %2652 = vmatprep.mubr.msk.bf16.mxu1 %vm452_vm0, %v2887_v21  ;;  %v438_v21 = vld [vmem:[#allocation2 + $0x50] sm:$0xff] }
  0x7d   : > { %2647 = vmatmul.mubr.msk.bf16.gmra.mrb[52].mxu0 %vm452_vm0, %v2920_v36 }
  0x7e   : > { %2670 = vmatprep.mubr.msk.bf16.mxu0 %vm452_vm0, %v2898_v26 }
  0x83   : > { %2653 = vmatmul.mubr.msk.bf16.vlgmr.msra.gmra.mrb[56].mxu1 %vm452_vm0, %v2898_v26 }
  0x84   : > { %2656 = vmatprep.mubr.msk.bf16.mxu1 %vm452_vm0, %v2901_v27 }
  0x85   : > { %2671 = vmatmul.mubr.msk.bf16.vlgmr.msra.gmra.mrb[56].mxu0 %vm452_vm0, %v2901_v27  ;;  %v439_v27 = vld [vmem:[#allocation2 + $0x58] sm:$0xff] }
  0x86   : > { %2674 = vmatprep.mubr.msk.bf16.mxu0 %vm452_vm0, %v2907_v29 }
  0x8b   : > { %2657 = vmatmul.mubr.msk.bf16.gmra.mrb[60].mxu1 %vm452_vm0, %v2907_v29 }
  0x8c   : > { %2660 = vmatprep.mubr.msk.bf16.mxu1 %vm452_vm0, %v2910_v30 }
  0x8d   : > { %2675 = vmatmul.mubr.msk.bf16.gmra.mrb[60].mxu0 %vm452_vm0, %v2910_v30 }
  0x8e   : > { %2678 = vmatprep.mubr.msk.bf16.mxu0 %vm452_vm0, %v2917_v35 }
  0x93   : > { %2661 = vmatmul.mubr.msk.bf16.gmra.mrb[64].mxu1 %vm452_vm0, %v2917_v35  ;;  %v437_v35 = vld [vmem:[#allocation2 + $0x48] sm:$0xff] }
  0x94   : > { %2664 = vmatprep.mubr.msk.bf16.mxu1 %vm452_vm0, %v2920_v36 }
  0x95   : > { %2679 = vmatmul.mubr.msk.bf16.gmra.mrb[64].mxu0 %vm452_vm0, %v2920_v36 }
  0x96   : > { %2682 = vmatprep.mubr.msk.bf16.mxu0 %vm452_vm0, %v2923_v37 }
  0x9b   : > { %2665 = vmatmul.mubr.msk.bf16.gmra.mrb[68].mxu1 %vm452_vm0, %v2923_v37 }
  0x9d   : > { %2683 = vmatmul.mubr.msk.bf16.gmra.mrb[68].mxu0 %vm452_vm0, %v2926_v38  ;;  %v429_v38 = vld [vmem:[#allocation2 + $0x8] sm:$0xff] }
  0xe6   : > { %v2536_v26 = vpop.f32.mrb[0].mxu1 }
  0xe7   : > { %v584_v29 = vadd.f32 %v2536_v26, %v438_v21  ;;  %v543_v30 = vpop.f32.mrb[1].mxu1  ;;  %v2528_v43 = vpop.f32.mrb[0].mxu0 }
  0xe8   : > { %v582_v42 = vadd.f32 %v543_v30, %v436_v25  ;;  %v2537_v36 = vpop.f32.mrb[2].mxu1  ;;  %v576_v46 = vadd.f32 %v2528_v43, %v430_v28  ;;  %v511_v47 = vpop.f32.mrb[1].mxu0 }
  0xe9   : > { %600 = vst.msk [vmem:[#allocation2 + $0x50] sm:$0xff] %vm334_vm2, %v584_v29  ;;  %v585_v45 = vadd.f32 %v2537_v36, %v439_v27  ;;  %v546_v37 = vpop.f32.mrb[3].mxu1  ;;  %v574_v49 = vadd.f32 %v511_v47, %v428_v41  ;;  %v2529_v50 = vpop.f32.mrb[2].mxu0 }
  0xea   : > { %598 = vst.msk [vmem:[#allocation2 + $0x40] sm:$0xff] %vm334_vm2, %v582_v42  ;;  %v583_v48 = vadd.f32 %v546_v37, %v437_v35  ;;  %592 = vst.msk [vmem:[#allocation2 + $0x10] sm:$0xff] %vm334_vm2, %v576_v46  ;;  %v577_v51 = vadd.f32 %v2529_v50, %v431_v44  ;;  %v514_v52 = vpop.f32.mrb[3].mxu0 }
  0xeb   : > { %601 = vst.msk [vmem:[#allocation2 + $0x58] sm:$0xff] %vm334_vm2, %v585_v45  ;;  %590 = vst.msk [vmem:[#allocation2] sm:$0xff] %vm334_vm2, %v574_v49  ;;  %v575_v54 = vadd.f32 %v514_v52, %v429_v38 }
  0xec   : > { %599 = vst.msk [vmem:[#allocation2 + $0x48] sm:$0xff] %vm334_vm2, %v583_v48  ;;  %593 = vst.msk [vmem:[#allocation2 + $0x18] sm:$0xff] %vm334_vm2, %v577_v51 }
  0xed   : > { %591 = vst.msk [vmem:[#allocation2 + $0x8] sm:$0xff] %vm334_vm2, %v575_v54 }
  0xee   : > { %v2540_v56 = vpop.f32.mrb[4].mxu1 }
  0xef   : > { %v588_v59 = vadd.f32 %v2540_v56, %v442_v53  ;;  %v559_v60 = vpop.f32.mrb[5].mxu1  ;;  %v2532_v1 = vpop.f32.mrb[4].mxu0 }
  0xf0   : > { %v586_v63 = vadd.f32 %v559_v60, %v440_v55  ;;  %v2541_v0 = vpop.f32.mrb[6].mxu1  ;;  %v580_v6 = vadd.f32 %v2532_v1, %v434_v58  ;;  %v527_v7 = vpop.f32.mrb[5].mxu0  ;;  %v616_v54 = vld [vmem:[#allocation2 + $0x50] sm:$0xff] }
  0xf1   : > { %604 = vst.msk [vmem:[#allocation2 + $0x70] sm:$0xff] %vm334_vm2, %v588_v59  ;;  %v589_v3 = vadd.f32 %v2541_v0, %v443_v57  ;;  %v562_v4 = vpop.f32.mrb[7].mxu1  ;;  %v578_v5 = vadd.f32 %v527_v7, %v432_v62  ;;  %v2533_v12 = vpop.f32.mrb[6].mxu0  ;;  %v608_v15 = vld [vmem:[#allocation2 + $0x10] sm:$0xff]  ;;  %v614_v57 = vld [vmem:[#allocation2 + $0x40] sm:$0xff] }
  0xf2   : > { %602 = vst.msk [vmem:[#allocation2 + $0x60] sm:$0xff] %vm334_vm2, %v586_v63  ;;  %v587_v10 = vadd.f32 %v562_v4, %v441_v61  ;;  %596 = vst.msk [vmem:[#allocation2 + $0x30] sm:$0xff] %vm334_vm2, %v580_v6  ;;  %v581_v13 = vadd.f32 %v2533_v12, %v435_v2  ;;  %v530_v14 = vpop.f32.mrb[7].mxu0  ;;  %v606_v17 = vld [vmem:[#allocation2] sm:$0xff]  ;;  %v617_v61 = vld [vmem:[#allocation2 + $0x58] sm:$0xff] }
  0xf3   : > { %605 = vst.msk [vmem:[#allocation2 + $0x78] sm:$0xff] %vm334_vm2, %v589_v3  ;;  %594 = vst.msk [vmem:[#allocation2 + $0x20] sm:$0xff] %vm334_vm2, %v578_v5  ;;  %v579_v16 = vadd.f32 %v530_v14, %v433_v8  ;;  %v609_v20 = vld [vmem:[#allocation2 + $0x18] sm:$0xff]  ;;  %v615_v3 = vld [vmem:[#allocation2 + $0x48] sm:$0xff] }
  0xf4   : > { %603 = vst.msk [vmem:[#allocation2 + $0x68] sm:$0xff] %vm334_vm2, %v587_v10  ;;  %597 = vst.msk [vmem:[#allocation2 + $0x38] sm:$0xff] %vm334_vm2, %v581_v13  ;;  %v607_v23 = vld [vmem:[#allocation2 + $0x8] sm:$0xff] }
  0xf5   : > { %595 = vst.msk [vmem:[#allocation2 + $0x28] sm:$0xff] %vm334_vm2, %v579_v16 }
  0xf6   : > { %v2546_v19 = vpop.f32.mrb[8].mxu1 }
  0xf7   : > { %v733_v9 = vadd.f32 %v2546_v19, %v608_v15  ;;  %v668_v22 = vpop.f32.mrb[9].mxu1 }
  0xf8   : > { %v731_v11 = vadd.f32 %v668_v22, %v606_v17  ;;  %v2547_v31 = vpop.f32.mrb[10].mxu1  ;;  %v2564_v32 = vpop.f32.mrb[8].mxu0  ;;  %v620_v16 = vld [vmem:[#allocation2 + $0x70] sm:$0xff] }
  0xf9   : > { %749 = vst.msk [vmem:[#allocation2 + $0x10] sm:$0xff] %vm334_vm2, %v733_v9  ;;  %v734_v33 = vadd.f32 %v2547_v31, %v609_v20  ;;  %v671_v18 = vpop.f32.mrb[11].mxu1  ;;  %v825_v24 = vpop.f32.mrb[9].mxu0  ;;  %v612_v21 = vld [vmem:[#allocation2 + $0x30] sm:$0xff]  ;;  %v618_v20 = vld [vmem:[#allocation2 + $0x60] sm:$0xff] }
  0xfa   : > { %747 = vst.msk [vmem:[#allocation2] sm:$0xff] %vm334_vm2, %v731_v11  ;;  %v732_v34 = vadd.f32 %v671_v18, %v607_v23  ;;  %v2565_v39 = vpop.f32.mrb[10].mxu0  ;;  %v610_v25 = vld [vmem:[#allocation2 + $0x20] sm:$0xff]  ;;  %v621_v11 = vld [vmem:[#allocation2 + $0x78] sm:$0xff] }
  0xfb   : > { %750 = vst.msk [vmem:[#allocation2 + $0x18] sm:$0xff] %vm334_vm2, %v734_v33  ;;  %v828_v40 = vpop.f32.mrb[11].mxu0  ;;  %v613_v27 = vld [vmem:[#allocation2 + $0x38] sm:$0xff] }
  0xfc   : > { %748 = vst.msk [vmem:[#allocation2 + $0x8] sm:$0xff] %vm334_vm2, %v732_v34  ;;  %v611_v30 = vld [vmem:[#allocation2 + $0x28] sm:$0xff] }
  0xfd   : > { %v619_v34 = vld [vmem:[#allocation2 + $0x68] sm:$0xff] }
  0xfe   : > { %v2550_v26 = vpop.f32.mrb[12].mxu1 }
  0xff   : > { %v737_v28 = vadd.f32 %v2550_v26, %v612_v21  ;;  %v684_v29 = vpop.f32.mrb[13].mxu1 }
 0x100   : > { %v765_v35 = vld [vmem:[#allocation2 + $0x10] sm:$0xff]  ;;  %v735_v41 = vadd.f32 %v684_v29, %v610_v25  ;;  %v2551_v42 = vpop.f32.mrb[14].mxu1  ;;  %v2568_v36 = vpop.f32.mrb[12].mxu0 }
 0x101   : > { %v890_v43 = vadd.f32 %v2564_v32, %v765_v35  ;;  %753 = vst.msk [vmem:[#allocation2 + $0x30] sm:$0xff] %vm334_vm2, %v737_v28  ;;  %v763_v44 = vld [vmem:[#allocation2] sm:$0xff]  ;;  %v738_v45 = vadd.f32 %v2551_v42, %v613_v27  ;;  %v687_v37 = vpop.f32.mrb[15].mxu1  ;;  %v841_v46 = vpop.f32.mrb[13].mxu0 }
 0x102   : > { %v888_v47 = vadd.f32 %v825_v24, %v763_v44  ;;  %751 = vst.msk [vmem:[#allocation2 + $0x20] sm:$0xff] %vm334_vm2, %v735_v41  ;;  %v766_v38 = vld [vmem:[#allocation2 + $0x18] sm:$0xff]  ;;  %v736_v48 = vadd.f32 %v687_v37, %v611_v30  ;;  %v2569_v49 = vpop.f32.mrb[14].mxu0 }
 0x103   : > { %906 = vst.msk [vmem:[#allocation2 + $0x10] sm:$0xff] %vm334_vm2, %v890_v43  ;;  %v891_v50 = vadd.f32 %v2565_v39, %v766_v38  ;;  %754 = vst.msk [vmem:[#allocation2 + $0x38] sm:$0xff] %vm334_vm2, %v738_v45  ;;  %v764_v51 = vld [vmem:[#allocation2 + $0x8] sm:$0xff]  ;;  %v844_v52 = vpop.f32.mrb[15].mxu0 }
 0x104   : > { %904 = vst.msk [vmem:[#allocation2] sm:$0xff] %vm334_vm2, %v888_v47  ;;  %v889_v53 = vadd.f32 %v828_v40, %v764_v51  ;;  %752 = vst.msk [vmem:[#allocation2 + $0x28] sm:$0xff] %vm334_vm2, %v736_v48 }
 0x105   : > { %907 = vst.msk [vmem:[#allocation2 + $0x18] sm:$0xff] %vm334_vm2, %v891_v50 }
 0x106   : > { %905 = vst.msk [vmem:[#allocation2 + $0x8] sm:$0xff] %vm334_vm2, %v889_v53  ;;  %v2554_v55 = vpop.f32.mrb[16].mxu1 }
 0x107   : > { %v741_v56 = vadd.f32 %v2554_v55, %v616_v54  ;;  %v700_v58 = vpop.f32.mrb[17].mxu1 }
 0x108   : > { %v769_v59 = vld [vmem:[#allocation2 + $0x30] sm:$0xff]  ;;  %v739_v60 = vadd.f32 %v700_v58, %v614_v57  ;;  %v2555_v62 = vpop.f32.mrb[18].mxu1  ;;  %v2572_v63 = vpop.f32.mrb[16].mxu0 }
 0x109   : > { %v894_v0 = vadd.f32 %v2568_v36, %v769_v59  ;;  %757 = vst.msk [vmem:[#allocation2 + $0x50] sm:$0xff] %vm334_vm2, %v741_v56  ;;  %v767_v1 = vld [vmem:[#allocation2 + $0x20] sm:$0xff]  ;;  %v742_v2 = vadd.f32 %v2555_v62, %v617_v61  ;;  %v703_v4 = vpop.f32.mrb[19].mxu1  ;;  %v857_v6 = vpop.f32.mrb[17].mxu0 }
 0x10a   : > { %v892_v7 = vadd.f32 %v841_v46, %v767_v1  ;;  %755 = vst.msk [vmem:[#allocation2 + $0x40] sm:$0xff] %vm334_vm2, %v739_v60  ;;  %v770_v8 = vld [vmem:[#allocation2 + $0x38] sm:$0xff]  ;;  %v740_v10 = vadd.f32 %v703_v4, %v615_v3  ;;  %v2573_v5 = vpop.f32.mrb[18].mxu0  ;;  %v922_v41 = vld [vmem:[#allocation2 + $0x10] sm:$0xff] }
 0x10b   : > { %910 = vst.msk [vmem:[#allocation2 + $0x30] sm:$0xff] %vm334_vm2, %v894_v0  ;;  %v895_v12 = vadd.f32 %v2569_v49, %v770_v8  ;;  %758 = vst.msk [vmem:[#allocation2 + $0x58] sm:$0xff] %vm334_vm2, %v742_v2  ;;  %v768_v13 = vld [vmem:[#allocation2 + $0x28] sm:$0xff]  ;;  %v860_v14 = vpop.f32.mrb[19].mxu0  ;;  %v920_v43 = vld [vmem:[#allocation2] sm:$0xff] }
 0x10c   : > { %908 = vst.msk [vmem:[#allocation2 + $0x20] sm:$0xff] %vm334_vm2, %v892_v7  ;;  %v893_v15 = vadd.f32 %v844_v52, %v768_v13  ;;  %756 = vst.msk [vmem:[#allocation2 + $0x48] sm:$0xff] %vm334_vm2, %v740_v10  ;;  %v923_v46 = vld [vmem:[#allocation2 + $0x18] sm:$0xff] }
 0x10d   : > { %911 = vst.msk [vmem:[#allocation2 + $0x38] sm:$0xff] %vm334_vm2, %v895_v12  ;;  %v921_v51 = vld [vmem:[#allocation2 + $0x8] sm:$0xff] }
 0x10e   : > { %909 = vst.msk [vmem:[#allocation2 + $0x28] sm:$0xff] %vm334_vm2, %v893_v15  ;;  %v2558_v17 = vpop.f32.mrb[20].mxu1 }
 0x10f   : > { %v745_v19 = vadd.f32 %v2558_v17, %v620_v16  ;;  %v716_v9 = vpop.f32.mrb[21].mxu1 }
 0x110   : > { %v773_v22 = vld [vmem:[#allocation2 + $0x50] sm:$0xff]  ;;  %v743_v23 = vadd.f32 %v716_v9, %v618_v20  ;;  %v2559_v31 = vpop.f32.mrb[22].mxu1  ;;  %v2576_v32 = vpop.f32.mrb[20].mxu0 }
 0x111   : > { %v898_v33 = vadd.f32 %v2572_v63, %v773_v22  ;;  %761 = vst.msk [vmem:[#allocation2 + $0x70] sm:$0xff] %vm334_vm2, %v745_v19  ;;  %v771_v18 = vld [vmem:[#allocation2 + $0x40] sm:$0xff]  ;;  %v746_v24 = vadd.f32 %v2559_v31, %v621_v11  ;;  %v719_v39 = vpop.f32.mrb[23].mxu1  ;;  %v873_v40 = vpop.f32.mrb[21].mxu0 }
 0x112   : > { %v896_v21 = vadd.f32 %v857_v6, %v771_v18  ;;  %759 = vst.msk [vmem:[#allocation2 + $0x60] sm:$0xff] %vm334_vm2, %v743_v23  ;;  %v774_v25 = vld [vmem:[#allocation2 + $0x58] sm:$0xff]  ;;  %v744_v26 = vadd.f32 %v719_v39, %v619_v34  ;;  %v2577_v27 = vpop.f32.mrb[22].mxu0  ;;  %v926_v62 = vld [vmem:[#allocation2 + $0x30] sm:$0xff] }
 0x113   : > { %914 = vst.msk [vmem:[#allocation2 + $0x50] sm:$0xff] %vm334_vm2, %v898_v33  ;;  %v899_v28 = vadd.f32 %v2573_v5, %v774_v25  ;;  %762 = vst.msk [vmem:[#allocation2 + $0x78] sm:$0xff] %vm334_vm2, %v746_v24  ;;  %v772_v29 = vld [vmem:[#allocation2 + $0x48] sm:$0xff]  ;;  %v876_v30 = vpop.f32.mrb[23].mxu0  ;;  %v924_v1 = vld [vmem:[#allocation2 + $0x20] sm:$0xff] }
 0x114   : > { %912 = vst.msk [vmem:[#allocation2 + $0x40] sm:$0xff] %vm334_vm2, %v896_v21  ;;  %v897_v35 = vadd.f32 %v860_v14, %v772_v29  ;;  %760 = vst.msk [vmem:[#allocation2 + $0x68] sm:$0xff] %vm334_vm2, %v744_v26  ;;  %v927_v6 = vld [vmem:[#allocation2 + $0x38] sm:$0xff] }
 0x115   : > { %915 = vst.msk [vmem:[#allocation2 + $0x58] sm:$0xff] %vm334_vm2, %v899_v28  ;;  %v925_v13 = vld [vmem:[#allocation2 + $0x28] sm:$0xff] }
 0x116   : > { %913 = vst.msk [vmem:[#allocation2 + $0x48] sm:$0xff] %vm334_vm2, %v897_v35  ;;  %v2582_v42 = vpop.f32.mrb[24].mxu1 }
 0x117   : > { %v1128_v36 = vadd.f32 %v2582_v42, %v922_v41  ;;  %v1063_v44 = vpop.f32.mrb[25].mxu1 }
 0x118   : > { %v777_v45 = vld [vmem:[#allocation2 + $0x70] sm:$0xff]  ;;  %v1126_v37 = vadd.f32 %v1063_v44, %v920_v43  ;;  %v2583_v47 = vpop.f32.mrb[26].mxu1  ;;  %v2600_v38 = vpop.f32.mrb[24].mxu0 }
 0x119   : > { %v902_v48 = vadd.f32 %v2576_v32, %v777_v45  ;;  %v775_v49 = vld [vmem:[#allocation2 + $0x60] sm:$0xff]  ;;  %1144 = vst.msk [vmem:[#allocation2 + $0x10] sm:$0xff] %vm334_vm2, %v1128_v36  ;;  %v1129_v50 = vadd.f32 %v2583_v47, %v923_v46  ;;  %v1066_v52 = vpop.f32.mrb[27].mxu1  ;;  %v1227_v53 = vpop.f32.mrb[25].mxu0 }
 0x11a   : > { %v900_v54 = vadd.f32 %v873_v40, %v775_v49  ;;  %v778_v55 = vld [vmem:[#allocation2 + $0x78] sm:$0xff]  ;;  %1142 = vst.msk [vmem:[#allocation2] sm:$0xff] %vm334_vm2, %v1126_v37  ;;  %v1127_v56 = vadd.f32 %v1066_v52, %v921_v51  ;;  %v2601_v57 = vpop.f32.mrb[26].mxu0  ;;  %v930_v31 = vld [vmem:[#allocation2 + $0x50] sm:$0xff] }
 0x11b   : > { %918 = vst.msk [vmem:[#allocation2 + $0x70] sm:$0xff] %vm334_vm2, %v902_v48  ;;  %v903_v58 = vadd.f32 %v2577_v27, %v778_v55  ;;  %v776_v59 = vld [vmem:[#allocation2 + $0x68] sm:$0xff]  ;;  %1145 = vst.msk [vmem:[#allocation2 + $0x18] sm:$0xff] %vm334_vm2, %v1129_v50  ;;  %v1230_v60 = vpop.f32.mrb[27].mxu0  ;;  %v928_v18 = vld [vmem:[#allocation2 + $0x40] sm:$0xff] }
 0x11c   : > { %916 = vst.msk [vmem:[#allocation2 + $0x60] sm:$0xff] %vm334_vm2, %v900_v54  ;;  %v901_v61 = vadd.f32 %v876_v30, %v776_v59  ;;  %1143 = vst.msk [vmem:[#allocation2 + $0x8] sm:$0xff] %vm334_vm2, %v1127_v56  ;;  %v931_v40 = vld [vmem:[#allocation2 + $0x58] sm:$0xff] }
 0x11d   : > { %919 = vst.msk [vmem:[#allocation2 + $0x78] sm:$0xff] %vm334_vm2, %v903_v58  ;;  %v929_v29 = vld [vmem:[#allocation2 + $0x48] sm:$0xff] }
 0x11e   : > { %917 = vst.msk [vmem:[#allocation2 + $0x68] sm:$0xff] %vm334_vm2, %v901_v61  ;;  %v2586_v63 = vpop.f32.mrb[28].mxu1 }
 0x11f   : > { %v1132_v0 = vadd.f32 %v2586_v63, %v926_v62  ;;  %v1079_v2 = vpop.f32.mrb[29].mxu1 }
 0x120   : > { %v1160_v3 = vld [vmem:[#allocation2 + $0x10] sm:$0xff]  ;;  %v1130_v4 = vadd.f32 %v1079_v2, %v924_v1  ;;  %v2587_v7 = vpop.f32.mrb[30].mxu1  ;;  %v2604_v8 = vpop.f32.mrb[28].mxu0 }
 0x121   : > { %v1292_v10 = vadd.f32 %v2600_v38, %v1160_v3  ;;  %1148 = vst.msk [vmem:[#allocation2 + $0x30] sm:$0xff] %vm334_vm2, %v1132_v0  ;;  %v1158_v5 = vld [vmem:[#allocation2] sm:$0xff]  ;;  %v1133_v12 = vadd.f32 %v2587_v7, %v927_v6  ;;  %v1082_v14 = vpop.f32.mrb[31].mxu1  ;;  %v1243_v15 = vpop.f32.mrb[29].mxu0 }
 0x122   : > { %v1290_v16 = vadd.f32 %v1227_v53, %v1158_v5  ;;  %1146 = vst.msk [vmem:[#allocation2 + $0x20] sm:$0xff] %vm334_vm2, %v1130_v4  ;;  %v1161_v17 = vld [vmem:[#allocation2 + $0x18] sm:$0xff]  ;;  %v1131_v19 = vadd.f32 %v1082_v14, %v925_v13  ;;  %v2605_v20 = vpop.f32.mrb[30].mxu0  ;;  %v934_v47 = vld [vmem:[#allocation2 + $0x70] sm:$0xff] }
 0x123   : > { %1308 = vst.msk [vmem:[#allocation2 + $0x10] sm:$0xff] %vm334_vm2, %v1292_v10  ;;  %v1293_v9 = vadd.f32 %v2601_v57, %v1161_v17  ;;  %1149 = vst.msk [vmem:[#allocation2 + $0x38] sm:$0xff] %vm334_vm2, %v1133_v12  ;;  %v1159_v22 = vld [vmem:[#allocation2 + $0x8] sm:$0xff]  ;;  %v1246_v23 = vpop.f32.mrb[31].mxu0  ;;  %v932_v49 = vld [vmem:[#allocation2 + $0x60] sm:$0xff] }
 0x124   : > { %1306 = vst.msk [vmem:[#allocation2] sm:$0xff] %vm334_vm2, %v1290_v16  ;;  %v1291_v11 = vadd.f32 %v1230_v60, %v1159_v22  ;;  %1147 = vst.msk [vmem:[#allocation2 + $0x28] sm:$0xff] %vm334_vm2, %v1131_v19  ;;  %v935_v53 = vld [vmem:[#allocation2 + $0x78] sm:$0xff] }
 0x125   : > { %1309 = vst.msk [vmem:[#allocation2 + $0x18] sm:$0xff] %vm334_vm2, %v1293_v9  ;;  %v933_v59 = vld [vmem:[#allocation2 + $0x68] sm:$0xff] }
 0x126   : > { %1307 = vst.msk [vmem:[#allocation2 + $0x8] sm:$0xff] %vm334_vm2, %v1291_v11  ;;  %v2590_v32 = vpop.f32.mrb[32].mxu1 }
 0x127   : > { %v1136_v33 = vadd.f32 %v2590_v32, %v930_v31  ;;  %v1095_v24 = vpop.f32.mrb[33].mxu1 }
 0x128   : > { %v1164_v34 = vld [vmem:[#allocation2 + $0x30] sm:$0xff]  ;;  %v1134_v39 = vadd.f32 %v1095_v24, %v928_v18  ;;  %v2591_v21 = vpop.f32.mrb[34].mxu1  ;;  %v2608_v25 = vpop.f32.mrb[32].mxu0 }
 0x129   : > { %v1296_v26 = vadd.f32 %v2604_v8, %v1164_v34  ;;  %1152 = vst.msk [vmem:[#allocation2 + $0x50] sm:$0xff] %vm334_vm2, %v1136_v33  ;;  %v1162_v27 = vld [vmem:[#allocation2 + $0x20] sm:$0xff]  ;;  %v1137_v28 = vadd.f32 %v2591_v21, %v931_v40  ;;  %v1098_v30 = vpop.f32.mrb[35].mxu1  ;;  %v1259_v35 = vpop.f32.mrb[33].mxu0 }
 0x12a   : > { %v1294_v41 = vadd.f32 %v1243_v15, %v1162_v27  ;;  %1150 = vst.msk [vmem:[#allocation2 + $0x40] sm:$0xff] %vm334_vm2, %v1134_v39  ;;  %v1165_v42 = vld [vmem:[#allocation2 + $0x38] sm:$0xff]  ;;  %v1135_v36 = vadd.f32 %v1098_v30, %v929_v29  ;;  %v2609_v43 = vpop.f32.mrb[34].mxu0  ;;  %v1324_v7 = vld [vmem:[#allocation2 + $0x10] sm:$0xff] }
 0x12b   : > { %1312 = vst.msk [vmem:[#allocation2 + $0x30] sm:$0xff] %vm334_vm2, %v1296_v26  ;;  %v1297_v44 = vadd.f32 %v2605_v20, %v1165_v42  ;;  %1153 = vst.msk [vmem:[#allocation2 + $0x58] sm:$0xff] %vm334_vm2, %v1137_v28  ;;  %v1163_v45 = vld [vmem:[#allocation2 + $0x28] sm:$0xff]  ;;  %v1262_v37 = vpop.f32.mrb[35].mxu0  ;;  %v1322_v5 = vld [vmem:[#allocation2] sm:$0xff] }
 0x12c   : > { %1310 = vst.msk [vmem:[#allocation2 + $0x20] sm:$0xff] %vm334_vm2, %v1294_v41  ;;  %v1295_v46 = vadd.f32 %v1246_v23, %v1163_v45  ;;  %1151 = vst.msk [vmem:[#allocation2 + $0x48] sm:$0xff] %vm334_vm2, %v1135_v36  ;;  %v1325_v15 = vld [vmem:[#allocation2 + $0x18] sm:$0xff] }
 0x12d   : > { %1313 = vst.msk [vmem:[#allocation2 + $0x38] sm:$0xff] %vm334_vm2, %v1297_v44  ;;  %v1323_v22 = vld [vmem:[#allocation2 + $0x8] sm:$0xff] }
 0x12e   : > { %1311 = vst.msk [vmem:[#allocation2 + $0x28] sm:$0xff] %vm334_vm2, %v1295_v46  ;;  %v2594_v38 = vpop.f32.mrb[36].mxu1 }
 0x12f   : > { %v1140_v48 = vadd.f32 %v2594_v38, %v934_v47  ;;  %v1111_v50 = vpop.f32.mrb[37].mxu1 }
 0x130   : > { %v1168_v51 = vld [vmem:[#allocation2 + $0x50] sm:$0xff]  ;;  %v1138_v52 = vadd.f32 %v1111_v50, %v932_v49  ;;  %v2595_v54 = vpop.f32.mrb[38].mxu1  ;;  %v2612_v55 = vpop.f32.mrb[36].mxu0 }
 0x131   : > { %v1300_v56 = vadd.f32 %v2608_v25, %v1168_v51  ;;  %1156 = vst.msk [vmem:[#allocation2 + $0x70] sm:$0xff] %vm334_vm2, %v1140_v48  ;;  %v1166_v57 = vld [vmem:[#allocation2 + $0x40] sm:$0xff]  ;;  %v1141_v58 = vadd.f32 %v2595_v54, %v935_v53  ;;  %v1114_v60 = vpop.f32.mrb[39].mxu1  ;;  %v1275_v61 = vpop.f32.mrb[37].mxu0 }
 0x132   : > { %v1298_v62 = vadd.f32 %v1259_v35, %v1166_v57  ;;  %1154 = vst.msk [vmem:[#allocation2 + $0x60] sm:$0xff] %vm334_vm2, %v1138_v52  ;;  %v1169_v63 = vld [vmem:[#allocation2 + $0x58] sm:$0xff]  ;;  %v1139_v0 = vadd.f32 %v1114_v60, %v933_v59  ;;  %v2613_v1 = vpop.f32.mrb[38].mxu0  ;;  %v1328_v21 = vld [vmem:[#allocation2 + $0x30] sm:$0xff] }
 0x133   : > { %1316 = vst.msk [vmem:[#allocation2 + $0x50] sm:$0xff] %vm334_vm2, %v1300_v56  ;;  %v1301_v2 = vadd.f32 %v2609_v43, %v1169_v63  ;;  %1157 = vst.msk [vmem:[#allocation2 + $0x78] sm:$0xff] %vm334_vm2, %v1141_v58  ;;  %v1167_v3 = vld [vmem:[#allocation2 + $0x48] sm:$0xff]  ;;  %v1278_v4 = vpop.f32.mrb[39].mxu0  ;;  %v1326_v27 = vld [vmem:[#allocation2 + $0x20] sm:$0xff] }
 0x134   : > { %1314 = vst.msk [vmem:[#allocation2 + $0x40] sm:$0xff] %vm334_vm2, %v1298_v62  ;;  %v1299_v6 = vadd.f32 %v1262_v37, %v1167_v3  ;;  %1155 = vst.msk [vmem:[#allocation2 + $0x68] sm:$0xff] %vm334_vm2, %v1139_v0  ;;  %v1329_v35 = vld [vmem:[#allocation2 + $0x38] sm:$0xff] }
 0x135   : > { %1317 = vst.msk [vmem:[#allocation2 + $0x58] sm:$0xff] %vm334_vm2, %v1301_v2  ;;  %v1327_v45 = vld [vmem:[#allocation2 + $0x28] sm:$0xff] }
 0x136   : > { %1315 = vst.msk [vmem:[#allocation2 + $0x48] sm:$0xff] %vm334_vm2, %v1299_v6  ;;  %v2618_v8 = vpop.f32.mrb[40].mxu1 }
 0x137   : > { %v1457_v10 = vadd.f32 %v2618_v8, %v1324_v7  ;;  %v1392_v12 = vpop.f32.mrb[41].mxu1 }
 0x138   : > { %v1172_v13 = vld [vmem:[#allocation2 + $0x70] sm:$0xff]  ;;  %v1455_v14 = vadd.f32 %v1392_v12, %v1322_v5  ;;  %v2619_v16 = vpop.f32.mrb[42].mxu1  ;;  %v2636_v17 = vpop.f32.mrb[40].mxu0 }
 0x139   : > { %v1304_v19 = vadd.f32 %v2612_v55, %v1172_v13  ;;  %v1170_v20 = vld [vmem:[#allocation2 + $0x60] sm:$0xff]  ;;  %1473 = vst.msk [vmem:[#allocation2 + $0x10] sm:$0xff] %vm334_vm2, %v1457_v10  ;;  %v1458_v9 = vadd.f32 %v2619_v16, %v1325_v15  ;;  %v1395_v23 = vpop.f32.mrb[43].mxu1  ;;  %v1588_v11 = vpop.f32.mrb[41].mxu0 }
 0x13a   : > { %v1302_v31 = vadd.f32 %v1275_v61, %v1170_v20  ;;  %v1173_v32 = vld [vmem:[#allocation2 + $0x78] sm:$0xff]  ;;  %1471 = vst.msk [vmem:[#allocation2] sm:$0xff] %vm334_vm2, %v1455_v14  ;;  %v1456_v33 = vadd.f32 %v1395_v23, %v1323_v22  ;;  %v2637_v18 = vpop.f32.mrb[42].mxu0  ;;  %v1332_v54 = vld [vmem:[#allocation2 + $0x50] sm:$0xff] }
 0x13b   : > { %1320 = vst.msk [vmem:[#allocation2 + $0x70] sm:$0xff] %vm334_vm2, %v1304_v19  ;;  %v1305_v24 = vadd.f32 %v2613_v1, %v1173_v32  ;;  %v1171_v34 = vld [vmem:[#allocation2 + $0x68] sm:$0xff]  ;;  %1474 = vst.msk [vmem:[#allocation2 + $0x18] sm:$0xff] %vm334_vm2, %v1458_v9  ;;  %v1591_v39 = vpop.f32.mrb[43].mxu0  ;;  %v1330_v57 = vld [vmem:[#allocation2 + $0x40] sm:$0xff] }
 0x13c   : > { %1318 = vst.msk [vmem:[#allocation2 + $0x60] sm:$0xff] %vm334_vm2, %v1302_v31  ;;  %v1303_v40 = vadd.f32 %v1278_v4, %v1171_v34  ;;  %1472 = vst.msk [vmem:[#allocation2 + $0x8] sm:$0xff] %vm334_vm2, %v1456_v33  ;;  %v1333_v61 = vld [vmem:[#allocation2 + $0x58] sm:$0xff] }
 0x13d   : > { %1321 = vst.msk [vmem:[#allocation2 + $0x78] sm:$0xff] %vm334_vm2, %v1305_v24  ;;  %v1331_v3 = vld [vmem:[#allocation2 + $0x48] sm:$0xff] }
 0x13e   : > { %1319 = vst.msk [vmem:[#allocation2 + $0x68] sm:$0xff] %vm334_vm2, %v1303_v40  ;;  %v2622_v25 = vpop.f32.mrb[44].mxu1 }
 0x13f   : > { %v1461_v26 = vadd.f32 %v2622_v25, %v1328_v21  ;;  %v1408_v28 = vpop.f32.mrb[45].mxu1 }
 0x140   : > { %v1489_v29 = vld [vmem:[#allocation2 + $0x10] sm:$0xff]  ;;  %v1459_v30 = vadd.f32 %v1408_v28, %v1326_v27  ;;  %v2623_v41 = vpop.f32.mrb[46].mxu1  ;;  %v2640_v42 = vpop.f32.mrb[44].mxu0 }
 0x141   : > { %v1653_v36 = vadd.f32 %v2636_v17, %v1489_v29  ;;  %1477 = vst.msk [vmem:[#allocation2 + $0x30] sm:$0xff] %vm334_vm2, %v1461_v26  ;;  %v1487_v43 = vld [vmem:[#allocation2] sm:$0xff]  ;;  %v1462_v44 = vadd.f32 %v2623_v41, %v1329_v35  ;;  %v1411_v37 = vpop.f32.mrb[47].mxu1  ;;  %v1604_v46 = vpop.f32.mrb[45].mxu0 }
 0x142   : > { %v1651_v47 = vadd.f32 %v1588_v11, %v1487_v43  ;;  %1475 = vst.msk [vmem:[#allocation2 + $0x20] sm:$0xff] %vm334_vm2, %v1459_v30  ;;  %v1490_v38 = vld [vmem:[#allocation2 + $0x18] sm:$0xff]  ;;  %v1460_v48 = vadd.f32 %v1411_v37, %v1327_v45  ;;  %v2641_v49 = vpop.f32.mrb[46].mxu0  ;;  %v1336_v16 = vld [vmem:[#allocation2 + $0x70] sm:$0xff] }
 0x143   : > { %1669 = vst.msk [vmem:[#allocation2 + $0x10] sm:$0xff] %vm334_vm2, %v1653_v36  ;;  %v1654_v50 = vadd.f32 %v2637_v18, %v1490_v38  ;;  %1478 = vst.msk [vmem:[#allocation2 + $0x38] sm:$0xff] %vm334_vm2, %v1462_v44  ;;  %v1488_v51 = vld [vmem:[#allocation2 + $0x8] sm:$0xff]  ;;  %v1607_v52 = vpop.f32.mrb[47].mxu0  ;;  %v1334_v20 = vld [vmem:[#allocation2 + $0x60] sm:$0xff] }
 0x144   : > { %1667 = vst.msk [vmem:[#allocation2] sm:$0xff] %vm334_vm2, %v1651_v47  ;;  %v1652_v53 = vadd.f32 %v1591_v39, %v1488_v51  ;;  %1476 = vst.msk [vmem:[#allocation2 + $0x28] sm:$0xff] %vm334_vm2, %v1460_v48  ;;  %v1337_v11 = vld [vmem:[#allocation2 + $0x78] sm:$0xff] }
 0x145   : > { %1670 = vst.msk [vmem:[#allocation2 + $0x18] sm:$0xff] %vm334_vm2, %v1654_v50  ;;  %v1335_v34 = vld [vmem:[#allocation2 + $0x68] sm:$0xff] }
 0x146   : > { %1668 = vst.msk [vmem:[#allocation2 + $0x8] sm:$0xff] %vm334_vm2, %v1652_v53  ;;  %v2626_v55 = vpop.f32.mrb[48].mxu1 }
 0x147   : > { %v1465_v56 = vadd.f32 %v2626_v55, %v1332_v54  ;;  %v1424_v58 = vpop.f32.mrb[49].mxu1 }
 0x148   : > { %v1493_v59 = vld [vmem:[#allocation2 + $0x30] sm:$0xff]  ;;  %v1463_v60 = vadd.f32 %v1424_v58, %v1330_v57  ;;  %v2627_v62 = vpop.f32.mrb[50].mxu1  ;;  %v2644_v63 = vpop.f32.mrb[48].mxu0 }
 0x149   : > { %v1657_v0 = vadd.f32 %v2640_v42, %v1493_v59  ;;  %1481 = vst.msk [vmem:[#allocation2 + $0x50] sm:$0xff] %vm334_vm2, %v1465_v56  ;;  %v1491_v1 = vld [vmem:[#allocation2 + $0x20] sm:$0xff]  ;;  %v1466_v2 = vadd.f32 %v2627_v62, %v1333_v61  ;;  %v1427_v4 = vpop.f32.mrb[51].mxu1  ;;  %v1620_v6 = vpop.f32.mrb[49].mxu0 }
 0x14a   : > { %v1655_v7 = vadd.f32 %v1604_v46, %v1491_v1  ;;  %1479 = vst.msk [vmem:[#allocation2 + $0x40] sm:$0xff] %vm334_vm2, %v1463_v60  ;;  %v1494_v8 = vld [vmem:[#allocation2 + $0x38] sm:$0xff]  ;;  %v1464_v10 = vadd.f32 %v1427_v4, %v1331_v3  ;;  %v2645_v5 = vpop.f32.mrb[50].mxu0  ;;  %v1685_v41 = vld [vmem:[#allocation2 + $0x10] sm:$0xff] }
 0x14b   : > { %1673 = vst.msk [vmem:[#allocation2 + $0x30] sm:$0xff] %vm334_vm2, %v1657_v0  ;;  %v1658_v12 = vadd.f32 %v2641_v49, %v1494_v8  ;;  %1482 = vst.msk [vmem:[#allocation2 + $0x58] sm:$0xff] %vm334_vm2, %v1466_v2  ;;  %v1492_v13 = vld [vmem:[#allocation2 + $0x28] sm:$0xff]  ;;  %v1623_v14 = vpop.f32.mrb[51].mxu0  ;;  %v1683_v43 = vld [vmem:[#allocation2] sm:$0xff] }
 0x14c   : > { %1671 = vst.msk [vmem:[#allocation2 + $0x20] sm:$0xff] %vm334_vm2, %v1655_v7  ;;  %v1656_v15 = vadd.f32 %v1607_v52, %v1492_v13  ;;  %1480 = vst.msk [vmem:[#allocation2 + $0x48] sm:$0xff] %vm334_vm2, %v1464_v10  ;;  %v1686_v46 = vld [vmem:[#allocation2 + $0x18] sm:$0xff] }
 0x14d   : > { %1674 = vst.msk [vmem:[#allocation2 + $0x38] sm:$0xff] %vm334_vm2, %v1658_v12  ;;  %v1684_v51 = vld [vmem:[#allocation2 + $0x8] sm:$0xff] }
 0x14e   : > { %1672 = vst.msk [vmem:[#allocation2 + $0x28] sm:$0xff] %vm334_vm2, %v1656_v15  ;;  %v2630_v17 = vpop.f32.mrb[52].mxu1 }
 0x14f   : > { %v1469_v19 = vadd.f32 %v2630_v17, %v1336_v16  ;;  %v1440_v9 = vpop.f32.mrb[53].mxu1 }
 0x150   : > { %v1497_v22 = vld [vmem:[#allocation2 + $0x50] sm:$0xff]  ;;  %v1467_v23 = vadd.f32 %v1440_v9, %v1334_v20  ;;  %v2631_v31 = vpop.f32.mrb[54].mxu1  ;;  %v2648_v32 = vpop.f32.mrb[52].mxu0 }
 0x151   : > { %v1661_v33 = vadd.f32 %v2644_v63, %v1497_v22  ;;  %1485 = vst.msk [vmem:[#allocation2 + $0x70] sm:$0xff] %vm334_vm2, %v1469_v19  ;;  %v1495_v18 = vld [vmem:[#allocation2 + $0x40] sm:$0xff]  ;;  %v1470_v24 = vadd.f32 %v2631_v31, %v1337_v11  ;;  %v1443_v39 = vpop.f32.mrb[55].mxu1  ;;  %v1636_v40 = vpop.f32.mrb[53].mxu0 }
 0x152   : > { %v1659_v21 = vadd.f32 %v1620_v6, %v1495_v18  ;;  %1483 = vst.msk [vmem:[#allocation2 + $0x60] sm:$0xff] %vm334_vm2, %v1467_v23  ;;  %v1498_v25 = vld [vmem:[#allocation2 + $0x58] sm:$0xff]  ;;  %v1468_v26 = vadd.f32 %v1443_v39, %v1335_v34  ;;  %v2649_v27 = vpop.f32.mrb[54].mxu0  ;;  %v1689_v62 = vld [vmem:[#allocation2 + $0x30] sm:$0xff]  ;;  %v3202_v34 = vld [vmem:[%s3290_s3] ss:$0 sm:$0xff] }
 0x153   : > { %1677 = vst.msk [vmem:[#allocation2 + $0x50] sm:$0xff] %vm334_vm2, %v1661_v33  ;;  %v1662_v28 = vadd.f32 %v2645_v5, %v1498_v25  ;;  %1486 = vst.msk [vmem:[#allocation2 + $0x78] sm:$0xff] %vm334_vm2, %v1470_v24  ;;  %v1496_v29 = vld [vmem:[#allocation2 + $0x48] sm:$0xff]  ;;  %v1639_v30 = vpop.f32.mrb[55].mxu0  ;;  %v1687_v1 = vld [vmem:[#allocation2 + $0x20] sm:$0xff] }
 0x154   : > { %1675 = vst.msk [vmem:[#allocation2 + $0x40] sm:$0xff] %vm334_vm2, %v1659_v21  ;;  %v1660_v35 = vadd.f32 %v1623_v14, %v1496_v29  ;;  %1484 = vst.msk [vmem:[#allocation2 + $0x68] sm:$0xff] %vm334_vm2, %v1468_v26  ;;  %v1690_v6 = vld [vmem:[#allocation2 + $0x38] sm:$0xff] }
 0x155   : > { %1678 = vst.msk [vmem:[#allocation2 + $0x58] sm:$0xff] %vm334_vm2, %v1662_v28  ;;  %v1688_v13 = vld [vmem:[#allocation2 + $0x28] sm:$0xff] }
 0x156   : > { %1676 = vst.msk [vmem:[#allocation2 + $0x48] sm:$0xff] %vm334_vm2, %v1660_v35  ;;  %v2654_v42 = vpop.f32.mrb[56].mxu1 }
 0x157   : > { %v1812_v36 = vadd.f32 %v2654_v42, %v1685_v41  ;;  %v1747_v44 = vpop.f32.mrb[57].mxu1 }
 0x158   : > { %v1501_v45 = vld [vmem:[#allocation2 + $0x70] sm:$0xff]  ;;  %v1810_v37 = vadd.f32 %v1747_v44, %v1683_v43  ;;  %v2655_v47 = vpop.f32.mrb[58].mxu1  ;;  %v2672_v38 = vpop.f32.mrb[56].mxu0 }
 0x159   : > { %v1665_v48 = vadd.f32 %v2648_v32, %v1501_v45  ;;  %v1499_v49 = vld [vmem:[#allocation2 + $0x60] sm:$0xff]  ;;  %1828 = vst.msk [vmem:[#allocation2 + $0x10] sm:$0xff] %vm334_vm2, %v1812_v36  ;;  %v1813_v50 = vadd.f32 %v2655_v47, %v1686_v46  ;;  %v1750_v52 = vpop.f32.mrb[59].mxu1  ;;  %v1906_v53 = vpop.f32.mrb[57].mxu0 }
 0x15a   : > { %v1663_v54 = vadd.f32 %v1636_v40, %v1499_v49  ;;  %v1502_v55 = vld [vmem:[#allocation2 + $0x78] sm:$0xff]  ;;  %1826 = vst.msk [vmem:[#allocation2] sm:$0xff] %vm334_vm2, %v1810_v37  ;;  %v1811_v56 = vadd.f32 %v1750_v52, %v1684_v51  ;;  %v2673_v57 = vpop.f32.mrb[58].mxu0  ;;  %v1693_v31 = vld [vmem:[#allocation2 + $0x50] sm:$0xff] }
 0x15b   : > { %1681 = vst.msk [vmem:[#allocation2 + $0x70] sm:$0xff] %vm334_vm2, %v1665_v48  ;;  %v1666_v58 = vadd.f32 %v2649_v27, %v1502_v55  ;;  %v1500_v59 = vld [vmem:[#allocation2 + $0x68] sm:$0xff]  ;;  %1829 = vst.msk [vmem:[#allocation2 + $0x18] sm:$0xff] %vm334_vm2, %v1813_v50  ;;  %v1909_v60 = vpop.f32.mrb[59].mxu0  ;;  %v1691_v18 = vld [vmem:[#allocation2 + $0x40] sm:$0xff] }
 0x15c   : > { %1679 = vst.msk [vmem:[#allocation2 + $0x60] sm:$0xff] %vm334_vm2, %v1663_v54  ;;  %v1664_v61 = vadd.f32 %v1639_v30, %v1500_v59  ;;  %1827 = vst.msk [vmem:[#allocation2 + $0x8] sm:$0xff] %vm334_vm2, %v1811_v56  ;;  %v1694_v21 = vld [vmem:[#allocation2 + $0x58] sm:$0xff] }
 0x15d   : > { %1682 = vst.msk [vmem:[#allocation2 + $0x78] sm:$0xff] %vm334_vm2, %v1666_v58  ;;  %v1692_v30 = vld [vmem:[#allocation2 + $0x48] sm:$0xff] }
 0x15e   : > { %1680 = vst.msk [vmem:[#allocation2 + $0x68] sm:$0xff] %vm334_vm2, %v1664_v61  ;;  %v2658_v63 = vpop.f32.mrb[60].mxu1 }
 0x15f   : > { %v1816_v0 = vadd.f32 %v2658_v63, %v1689_v62  ;;  %v1763_v2 = vpop.f32.mrb[61].mxu1 }
 0x160   : > { %v1844_v3 = vld [vmem:[#allocation2 + $0x10] sm:$0xff]  ;;  %v1814_v4 = vadd.f32 %v1763_v2, %v1687_v1  ;;  %v2659_v7 = vpop.f32.mrb[62].mxu1  ;;  %v2676_v8 = vpop.f32.mrb[60].mxu0 }
 0x161   : > { %v1971_v10 = vadd.f32 %v2672_v38, %v1844_v3  ;;  %1832 = vst.msk [vmem:[#allocation2 + $0x30] sm:$0xff] %vm334_vm2, %v1816_v0  ;;  %v1842_v5 = vld [vmem:[#allocation2] sm:$0xff]  ;;  %v1817_v12 = vadd.f32 %v2659_v7, %v1690_v6  ;;  %v1766_v14 = vpop.f32.mrb[63].mxu1  ;;  %v1922_v15 = vpop.f32.mrb[61].mxu0 }
 0x162   : > { %v1969_v16 = vadd.f32 %v1906_v53, %v1842_v5  ;;  %1830 = vst.msk [vmem:[#allocation2 + $0x20] sm:$0xff] %vm334_vm2, %v1814_v4  ;;  %v1845_v17 = vld [vmem:[#allocation2 + $0x18] sm:$0xff]  ;;  %v1815_v19 = vadd.f32 %v1766_v14, %v1688_v13  ;;  %v2677_v20 = vpop.f32.mrb[62].mxu0 }
 0x163   : > { %1987 = vst.msk [vmem:[#allocation2 + $0x10] sm:$0xff] %vm334_vm2, %v1971_v10  ;;  %v1972_v9 = vadd.f32 %v2673_v57, %v1845_v17  ;;  %1833 = vst.msk [vmem:[#allocation2 + $0x38] sm:$0xff] %vm334_vm2, %v1817_v12  ;;  %v1843_v22 = vld [vmem:[#allocation2 + $0x8] sm:$0xff]  ;;  %v1925_v23 = vpop.f32.mrb[63].mxu0  ;;  %v1697_v57 = vld [vmem:[#allocation2 + $0x70] sm:$0xff] }
 0x164   : > { %1985 = vst.msk [vmem:[#allocation2] sm:$0xff] %vm334_vm2, %v1969_v16  ;;  %v1970_v11 = vadd.f32 %v1909_v60, %v1843_v22  ;;  %1831 = vst.msk [vmem:[#allocation2 + $0x28] sm:$0xff] %vm334_vm2, %v1815_v19  ;;  %v1695_v62 = vld [vmem:[#allocation2 + $0x60] sm:$0xff]  ;;  %v1698_v4 = vld [vmem:[#allocation2 + $0x78] sm:$0xff] }
 0x165   : > { %1988 = vst.msk [vmem:[#allocation2 + $0x18] sm:$0xff] %vm334_vm2, %v1972_v9  ;;  %v1696_v13 = vld [vmem:[#allocation2 + $0x68] sm:$0xff] }
 0x166   : > { %1986 = vst.msk [vmem:[#allocation2 + $0x8] sm:$0xff] %vm334_vm2, %v1970_v11  ;;  %v2662_v32 = vpop.f32.mrb[64].mxu1 }
 0x167   : > { %v1820_v33 = vadd.f32 %v2662_v32, %v1693_v31  ;;  %v1779_v24 = vpop.f32.mrb[65].mxu1 }
 0x168   : > { %v1848_v39 = vld [vmem:[#allocation2 + $0x30] sm:$0xff]  ;;  %v1818_v40 = vadd.f32 %v1779_v24, %v1691_v18  ;;  %v2663_v25 = vpop.f32.mrb[66].mxu1  ;;  %v2680_v26 = vpop.f32.mrb[64].mxu0 }
 0x169   : > { %v1975_v27 = vadd.f32 %v2676_v8, %v1848_v39  ;;  %1836 = vst.msk [vmem:[#allocation2 + $0x50] sm:$0xff] %vm334_vm2, %v1820_v33  ;;  %v1846_v28 = vld [vmem:[#allocation2 + $0x20] sm:$0xff]  ;;  %v1821_v29 = vadd.f32 %v2663_v25, %v1694_v21  ;;  %v1782_v35 = vpop.f32.mrb[67].mxu1  ;;  %v1938_v41 = vpop.f32.mrb[65].mxu0 }
 0x16a   : > { %v2003_v42 = vld [vmem:[#allocation2 + $0x10] sm:$0xff]  ;;  %v1973_v36 = vadd.f32 %v1922_v15, %v1846_v28  ;;  %1834 = vst.msk [vmem:[#allocation2 + $0x40] sm:$0xff] %vm334_vm2, %v1818_v40  ;;  %v1849_v43 = vld [vmem:[#allocation2 + $0x38] sm:$0xff]  ;;  %v1819_v44 = vadd.f32 %v1782_v35, %v1692_v30  ;;  %v2681_v45 = vpop.f32.mrb[66].mxu0 }
 0x16b   : > { %v2026_v37 = vadd.f32 %v3202_v34, %v2003_v42  ;;  %v2001_v46 = vld [vmem:[#allocation2] sm:$0xff]  ;;  %1991 = vst.msk [vmem:[#allocation2 + $0x30] sm:$0xff] %vm334_vm2, %v1975_v27  ;;  %v1976_v47 = vadd.f32 %v2677_v20, %v1849_v43  ;;  %1837 = vst.msk [vmem:[#allocation2 + $0x58] sm:$0xff] %vm334_vm2, %v1821_v29  ;;  %v1847_v38 = vld [vmem:[#allocation2 + $0x28] sm:$0xff]  ;;  %v1941_v48 = vpop.f32.mrb[67].mxu0 }
 0x16c   : > { %v2024_v49 = vadd.f32 %v3202_v34, %v2001_v46  ;;  %v2004_v50 = vld [vmem:[#allocation2 + $0x18] sm:$0xff]  ;;  %1989 = vst.msk [vmem:[#allocation2 + $0x20] sm:$0xff] %vm334_vm2, %v1973_v36  ;;  %v1974_v51 = vadd.f32 %v1925_v23, %v1847_v38  ;;  %1835 = vst.msk [vmem:[#allocation2 + $0x48] sm:$0xff] %vm334_vm2, %v1819_v44 }
 0x16d   : > { %v2042_v52 = vmax.f32 %v2026_v37, 0.0  ;;  %v2027_v53 = vadd.f32 %v3202_v34, %v2004_v50  ;;  %v2002_v54 = vld [vmem:[#allocation2 + $0x8] sm:$0xff]  ;;  %1992 = vst.msk [vmem:[#allocation2 + $0x38] sm:$0xff] %vm334_vm2, %v1976_v47 }
 0x16e   : > { %v2040_v55 = vmax.f32 %v2024_v49, 0.0  ;;  %v2025_v56 = vadd.f32 %v3202_v34, %v2002_v54  ;;  %1990 = vst.msk [vmem:[#allocation2 + $0x28] sm:$0xff] %vm334_vm2, %v1974_v51  ;;  %v2666_v58 = vpop.f32.mrb[68].mxu1 }
 0x16f   : > { %v2428_v59 = vpack.c.bf16 %v2042_v52, %v2042_v52  ;;  %v2043_v60 = vmax.f32 %v2027_v53, 0.0  ;;  %v1824_v61 = vadd.f32 %v2666_v58, %v1697_v57  ;;  %v1795_v63 = vpop.f32.mrb[69].mxu1 }
 0x170   : > { %v2426_v0 = vpack.c.bf16 %v2040_v55, %v2040_v55  ;;  %v2041_v1 = vmax.f32 %v2025_v56, 0.0  ;;  %v1852_v2 = vld [vmem:[#allocation2 + $0x50] sm:$0xff]  ;;  %v1822_v3 = vadd.f32 %v1795_v63, %v1695_v62  ;;  %v2667_v6 = vpop.f32.mrb[70].mxu1  ;;  %v2684_v7 = vpop.f32.mrb[68].mxu0 }
 0x171   : > { %2123 = vst.msk [vmem:[%s3218_s27 + $0x8] sm:$0xf] %vm2120_vm4, %v2428_v59  ;;  %v2429_v8 = vpack.c.bf16 %v2043_v60, %v2043_v60  ;;  %v1979_v10 = vadd.f32 %v2680_v26, %v1852_v2  ;;  %v1850_v5 = vld [vmem:[#allocation2 + $0x40] sm:$0xff]  ;;  %v1825_v12 = vadd.f32 %v2667_v6, %v1698_v4  ;;  %v1798_v14 = vpop.f32.mrb[71].mxu1  ;;  %v1954_v15 = vpop.f32.mrb[69].mxu0 }
 0x172   : > { %1840 = vst.msk [vmem:[#allocation2 + $0x70] sm:$0xff] %vm334_vm2, %v1824_v61  ;;  %v2427_v16 = vpack.c.bf16 %v2041_v1, %v2041_v1  ;;  %v2007_v17 = vld [vmem:[#allocation2 + $0x30] sm:$0xff]  ;;  %v1977_v19 = vadd.f32 %v1938_v41, %v1850_v5  ;;  %1838 = vst.msk [vmem:[#allocation2 + $0x60] sm:$0xff] %vm334_vm2, %v1822_v3  ;;  %v1853_v20 = vld [vmem:[#allocation2 + $0x58] sm:$0xff]  ;;  %v1823_v9 = vadd.f32 %v1798_v14, %v1696_v13  ;;  %v2685_v22 = vpop.f32.mrb[70].mxu0 }
 0x173   : > { %2121 = vst.msk [vmem:[%s3218_s27] sm:$0xf] %vm2120_vm4, %v2426_v0  ;;  %2124 = vst.msk [vmem:[%s3218_s27 + $0xc] sm:$0xf] %vm2120_vm4, %v2429_v8  ;;  %v2030_v23 = vadd.f32 %v3202_v34, %v2007_v17  ;;  %v2005_v11 = vld [vmem:[#allocation2 + $0x20] sm:$0xff]  ;;  %v1980_v31 = vadd.f32 %v2681_v45, %v1853_v20  ;;  %v1851_v32 = vld [vmem:[#allocation2 + $0x48] sm:$0xff] }
 0x174   : > { %1995 = vst.msk [vmem:[#allocation2 + $0x50] sm:$0xff] %vm334_vm2, %v1979_v10  ;;  %1841 = vst.msk [vmem:[#allocation2 + $0x78] sm:$0xff] %vm334_vm2, %v1825_v12  ;;  %v1957_v33 = vpop.f32.mrb[71].mxu0  ;;  %v2028_v18 = vadd.f32 %v3202_v34, %v2005_v11  ;;  %v2008_v24 = vld [vmem:[#allocation2 + $0x38] sm:$0xff]  ;;  %v1978_v39 = vadd.f32 %v1941_v48, %v1851_v32 }
 0x175   : > { %2122 = vst.msk [vmem:[%s3218_s27 + $0x4] sm:$0xf] %vm2120_vm4, %v2427_v16  ;;  %v2046_v40 = vmax.f32 %v2030_v23, 0.0  ;;  %v2031_v21 = vadd.f32 %v3202_v34, %v2008_v24  ;;  %v2006_v25 = vld [vmem:[#allocation2 + $0x28] sm:$0xff] }
 0x176   : > { %1993 = vst.msk [vmem:[#allocation2 + $0x40] sm:$0xff] %vm334_vm2, %v1977_v19  ;;  %1839 = vst.msk [vmem:[#allocation2 + $0x68] sm:$0xff] %vm334_vm2, %v1823_v9  ;;  %v2044_v26 = vmax.f32 %v2028_v18, 0.0  ;;  %v2029_v27 = vadd.f32 %v3202_v34, %v2006_v25 }
 0x177   : > { %1996 = vst.msk [vmem:[#allocation2 + $0x58] sm:$0xff] %vm334_vm2, %v1980_v31  ;;  %1994 = vst.msk [vmem:[#allocation2 + $0x48] sm:$0xff] %vm334_vm2, %v1978_v39  ;;  %v2432_v28 = vpack.c.bf16 %v2046_v40, %v2046_v40  ;;  %v2047_v29 = vmax.f32 %v2031_v21, 0.0 }
 0x178   : > { %v2430_v30 = vpack.c.bf16 %v2044_v26, %v2044_v26  ;;  %v2045_v35 = vmax.f32 %v2029_v27, 0.0 }
 0x179   : > { %v1856_v41 = vld [vmem:[#allocation2 + $0x70] sm:$0xff]  ;;  %2127 = vst.msk [vmem:[%s3218_s27 + $0x18] sm:$0xf] %vm2120_vm4, %v2432_v28  ;;  %v2433_v42 = vpack.c.bf16 %v2047_v29, %v2047_v29  ;;  %v1854_v43 = vld [vmem:[#allocation2 + $0x60] sm:$0xff] }
 0x17a   : > { %v1983_v36 = vadd.f32 %v2684_v7, %v1856_v41  ;;  %2125 = vst.msk [vmem:[%s3218_s27 + $0x10] sm:$0xf] %vm2120_vm4, %v2430_v30  ;;  %v2431_v44 = vpack.c.bf16 %v2045_v35, %v2045_v35  ;;  %v1981_v37 = vadd.f32 %v1954_v15, %v1854_v43 }
 0x17b   : > { %v2011_v45 = vld [vmem:[#allocation2 + $0x50] sm:$0xff]  ;;  %v1857_v46 = vld [vmem:[#allocation2 + $0x78] sm:$0xff]  ;;  %2128 = vst.msk [vmem:[%s3218_s27 + $0x1c] sm:$0xf] %vm2120_vm4, %v2433_v42 }
 0x17c   : > { %v2034_v47 = vadd.f32 %v3202_v34, %v2011_v45  ;;  %1999 = vst.msk [vmem:[#allocation2 + $0x70] sm:$0xff] %vm334_vm2, %v1983_v36  ;;  %v1984_v48 = vadd.f32 %v2685_v22, %v1857_v46  ;;  %1997 = vst.msk [vmem:[#allocation2 + $0x60] sm:$0xff] %vm334_vm2, %v1981_v37 }
 0x17d   : > { %v2009_v38 = vld [vmem:[#allocation2 + $0x40] sm:$0xff]  ;;  %v1855_v49 = vld [vmem:[#allocation2 + $0x68] sm:$0xff]  ;;  %2126 = vst.msk [vmem:[%s3218_s27 + $0x14] sm:$0xf] %vm2120_vm4, %v2431_v44 }
 0x17e   : > { %v2032_v50 = vadd.f32 %v3202_v34, %v2009_v38  ;;  %v2012_v51 = vld [vmem:[#allocation2 + $0x58] sm:$0xff]  ;;  %v1982_v52 = vadd.f32 %v1957_v33, %v1855_v49  ;;  %v2050_v53 = vmax.f32 %v2034_v47, 0.0  ;;  %v2010_v55 = vld [vmem:[#allocation2 + $0x48] sm:$0xff]  ;;  %2000 = vst.msk [vmem:[#allocation2 + $0x78] sm:$0xff] %vm334_vm2, %v1984_v48 }
 0x17f   : > { %v2035_v54 = vadd.f32 %v3202_v34, %v2012_v51  ;;  %v2033_v57 = vadd.f32 %v3202_v34, %v2010_v55 }
 0x180   : > { %v2048_v56 = vmax.f32 %v2032_v50, 0.0  ;;  %1998 = vst.msk [vmem:[#allocation2 + $0x68] sm:$0xff] %vm334_vm2, %v1982_v52  ;;  %v2436_v58 = vpack.c.bf16 %v2050_v53, %v2050_v53 }
 0x181   : > { %v2051_v59 = vmax.f32 %v2035_v54, 0.0  ;;  %v2049_v61 = vmax.f32 %v2033_v57, 0.0 }
 0x182   : > { %v2434_v60 = vpack.c.bf16 %v2048_v56, %v2048_v56  ;;  %2131 = vst.msk [vmem:[%s3218_s27 + $0x28] sm:$0xf] %vm2120_vm4, %v2436_v58 }
 0x183   : > { %v2437_v62 = vpack.c.bf16 %v2051_v59, %v2051_v59  ;;  %v2435_v63 = vpack.c.bf16 %v2049_v61, %v2049_v61  ;;  %v2015_v0 = vld [vmem:[#allocation2 + $0x70] sm:$0xff]  ;;  %v2013_v2 = vld [vmem:[#allocation2 + $0x60] sm:$0xff] }
 0x184   : > { %2129 = vst.msk [vmem:[%s3218_s27 + $0x20] sm:$0xf] %vm2120_vm4, %v2434_v60  ;;  %v2038_v1 = vadd.f32 %v3202_v34, %v2015_v0  ;;  %v2036_v3 = vadd.f32 %v3202_v34, %v2013_v2 }
 0x185   : > { %2132 = vst.msk [vmem:[%s3218_s27 + $0x2c] sm:$0xf] %vm2120_vm4, %v2437_v62  ;;  %2130 = vst.msk [vmem:[%s3218_s27 + $0x24] sm:$0xf] %vm2120_vm4, %v2435_v63  ;;  %v2016_v4 = vld [vmem:[#allocation2 + $0x78] sm:$0xff] }
 0x186   : > { %v2054_v6 = vmax.f32 %v2038_v1, 0.0  ;;  %v2039_v7 = vadd.f32 %v3202_v34, %v2016_v4  ;;  %v2052_v10 = vmax.f32 %v2036_v3, 0.0 }
 0x187   : > { %v2014_v8 = vld [vmem:[#allocation2 + $0x68] sm:$0xff] }
 0x188   : > { %v2037_v5 = vadd.f32 %v3202_v34, %v2014_v8  ;;  %v2440_v12 = vpack.c.bf16 %v2054_v6, %v2054_v6  ;;  %v2055_v13 = vmax.f32 %v2039_v7, 0.0  ;;  %v2438_v14 = vpack.c.bf16 %v2052_v10, %v2052_v10 }
 0x18a   : > { %v2053_v15 = vmax.f32 %v2037_v5, 0.0  ;;  %2135 = vst.msk [vmem:[%s3218_s27 + $0x38] sm:$0xf] %vm2120_vm4, %v2440_v12  ;;  %v2441_v16 = vpack.c.bf16 %v2055_v13, %v2055_v13  ;;  %2133 = vst.msk [vmem:[%s3218_s27 + $0x30] sm:$0xf] %vm2120_vm4, %v2438_v14 }
 0x18c   : > { %v2439_v17 = vpack.c.bf16 %v2053_v15, %v2053_v15  ;;  %2136 = vst.msk [vmem:[%s3218_s27 + $0x3c] sm:$0xf] %vm2120_vm4, %v2441_v16 }
 0x18e   : > { %2134 = vst.msk [vmem:[%s3218_s27 + $0x34] sm:$0xf] %vm2120_vm4, %v2439_v17 }
 0x18f PF: > { %s14_s17 = sadd.s32 1, %s2755_s17   ;;  %s3292_s15 = smov %s2751_s16 }
 0x190   : > { %p11_p5 = scmp.ge.s32.totalorder %s14_s17, 4   ;;  %s3293_s16 = smov %s3295_s18 }
 0x192   :  { %13 = sbr.rel (!%p11_p5) target bundleno = 2 (0x2), region = 83 }

</bundles_post_ra>
